<compile_context>
chip_gen: v7x
topology: tpu7x:2x2x1
jax: 0.10.0
libtpu: 0.0.40
codegen_flags: <defaults>
</compile_context>

<pallas_src>
import functools
import math

import jax
import jax.numpy as jnp
from jax.experimental import pallas as pl
from jax.experimental.pallas import tpu as pltpu

# ---- model hyper-parameters (nn_params unspecified; small defaults) --------
B, N = 2, 8          # batch, nodes per graph
DX, DE = 10, 5       # node / edge class counts (dim=10 is DiffAlign default)
HX, HE = 32, 16      # node / edge hidden widths
NH, DH = 4, 8        # attention heads, per-head dim (NH * DH == HX)


# ----------------------------- fused Pallas kernel --------------------------
def _ln_rows(x, g, b, eps=1e-5):
    """Layer norm over the last (lane) axis; g/b are [1, d]."""
    mu = jnp.mean(x, axis=-1, keepdims=True)
    var = jnp.mean((x - mu) ** 2, axis=-1, keepdims=True)
    return (x - mu) * jax.lax.rsqrt(var + eps) * g + b


def _diffalign_fused_kernel(
    # per-graph inputs
    x_ref, et_ref, temb_ref,
    # node-path weights
    w_x_in, b_x_in, w_t, b_t,
    w_qkv_h, b_qkv_h, w_o_h, b_o,
    w_ff1, b_ff1, w_ff2, b_ff2,
    ln1_g, ln1_b, ln2_g, ln2_b,
    w_x_out, b_x_out,
    # edge-path weights (pre-transposed: channels on sublanes, edges on lanes)
    w_e_in_t, b_e_in_t, w_e12_t, b_e12_t,
    w_eo_t, b_eo_t, lne_g, lne_b,
    w_e_out_t, b_e_out_t,
    # outputs
    x_logits_ref, e_logits_t_ref,
    *, n, n_head, d_head,
):
    f32 = jnp.float32
    nn = n * n

    x = x_ref[0].astype(f32)            # [N, DX]
    e_t = et_ref[0].astype(f32)         # [DE, N*N]   lane-dense edge layout
    temb_in = temb_ref[0].astype(f32)   # [1, HX]

    # ---- input embeddings + time conditioning (fused bias / ReLU) ----
    h_x = jnp.dot(x, w_x_in[...], preferred_element_type=f32) + b_x_in[...]
    temb = jnp.maximum(
        jnp.dot(temb_in, w_t[...], preferred_element_type=f32) + b_t[...], 0.0)
    h_x = h_x + temb                                               # [N, HX]

    h_e = (jnp.dot(w_e_in_t[...], e_t, preferred_element_type=f32)
           + b_e_in_t[...])                                        # [HE, N*N]

    # ---- fused QKV projection, head-major [3*NH, N, DH] (one batched matmul)
    hx_b = jnp.broadcast_to(h_x, (3 * n_head,) + h_x.shape)
    qkv = jnp.einsum("hnc,hcd->hnd", hx_b, w_qkv_h[...],
                     preferred_element_type=f32) + b_qkv_h[...]
    q = qkv[:n_head]
    k = qkv[n_head:2 * n_head]
    v = qkv[2 * n_head:]

    # ---- FiLM edge modulation terms (one fused e1||e2 matmul, keys on lanes)
    e12 = (jnp.dot(w_e12_t[...], h_e, preferred_element_type=f32)
           + b_e12_t[...])                                         # [2*NH, N*N]

    scale = 1.0 / math.sqrt(d_head)
    scores = jnp.einsum("hnd,hmd->hnm", q, k,
                        preferred_element_type=f32) * scale        # [NH, N, N]
    y_flat = scores.reshape(n_head, nn) * (e12[:n_head] + 1.0) + e12[n_head:]
    y = y_flat.reshape(n_head, n, n)                               # [NH, N, N]

    # ---- softmax over keys (last axis = lanes) + per-head context ----
    y_max = jnp.max(y, axis=-1, keepdims=True)
    p_un = jnp.exp(y - y_max)
    attn = p_un / jnp.sum(p_un, axis=-1, keepdims=True)
    ctx = jnp.einsum("hnm,hmd->hnd", attn, v, preferred_element_type=f32)

    # ---- output projection folded over heads (== concat_h(ctx) @ W_o) ----
    attn_o = jnp.einsum("hnd,hdc->hnc", ctx, w_o_h[...],
                        preferred_element_type=f32).sum(axis=0) + b_o[...]
    h_x = _ln_rows(h_x + attn_o, ln1_g[...], ln1_b[...])

    # ---- feed-forward (bias + ReLU + residual + LN fused) ----
    ff = jnp.maximum(
        jnp.dot(h_x, w_ff1[...], preferred_element_type=f32) + b_ff1[...], 0.0)
    ff = jnp.dot(ff, w_ff2[...], preferred_element_type=f32) + b_ff2[...]
    h_x = _ln_rows(h_x + ff, ln2_g[...], ln2_b[...])

    # ---- edge update: W_eo(y) + residual + LN over channels (axis 0) ----
    e_upd = (jnp.dot(w_eo_t[...], y_flat, preferred_element_type=f32)
             + b_eo_t[...])                                        # [HE, N*N]
    h_e = h_e + e_upd
    mu = jnp.mean(h_e, axis=0, keepdims=True)
    var = jnp.mean((h_e - mu) ** 2, axis=0, keepdims=True)
    h_e = (h_e - mu) * jax.lax.rsqrt(var + 1e-5) * lne_g[...] + lne_b[...]

    # ---- output heads ----
    x_logits_ref[0] = (jnp.dot(h_x, w_x_out[...], preferred_element_type=f32)
                       + b_x_out[...]).astype(x_logits_ref.dtype)
    e_logits_t_ref[0] = (jnp.dot(w_e_out_t[...], h_e, preferred_element_type=f32)
                         + b_e_out_t[...]).astype(e_logits_t_ref.dtype)


# ------------------------------- glue (JAX) ---------------------------------
def time_embedding(t_int, dim):
    half = dim // 2
    freqs = jnp.exp(-math.log(10000.0) * jnp.arange(half, dtype=jnp.float32) / half)
    args = t_int.astype(jnp.float32)[:, None] * freqs[None, :]
    return jnp.concatenate([jnp.sin(args), jnp.cos(args)], axis=-1)


def diffalign_forward(params, X, E, t_int):
    """DiffAlign.forward(g, t): one fused Pallas kernel for the whole denoiser."""
    p = params
    b, n, dx = X.shape
    de = E.shape[-1]
    nn = n * n

    # wrapper-side layout plumbing: lane-dense edge tensor [B, DE, N*N]
    Et = E.reshape(b, nn, de).transpose(0, 2, 1)
    temb_in = time_embedding(t_int, HX).reshape(b, 1, HX)

    # weight packing: fused QKV (head-major), fused e1||e2, transposed edge path
    def _row(v): return v.reshape(1, -1)
    def _col(v): return v.reshape(-1, 1)
    def _head_major(w): return w.reshape(HX, NH, DH).transpose(1, 0, 2)  # [NH,HX,DH]

    w_qkv_h = jnp.concatenate(
        [_head_major(p["w_q"]), _head_major(p["w_k"]), _head_major(p["w_v"])], axis=0)
    b_qkv_h = jnp.concatenate(
        [p["b_q"].reshape(NH, 1, DH), p["b_k"].reshape(NH, 1, DH),
         p["b_v"].reshape(NH, 1, DH)], axis=0)
    w_o_h = p["w_o"].reshape(NH, DH, HX)
    w_e12_t = jnp.concatenate([p["w_e1"], p["w_e2"]], axis=1).T     # [2*NH, HE]
    b_e12_t = jnp.concatenate([p["b_e1"], p["b_e2"]], axis=0).reshape(2 * NH, 1)

    weight_arrays = (
        p["w_x_in"], _row(p["b_x_in"]),
        p["w_t"], _row(p["b_t"]),
        w_qkv_h, b_qkv_h,
        w_o_h, _row(p["b_o"]),
        p["w_ff1"], _row(p["b_ff1"]),
        p["w_ff2"], _row(p["b_ff2"]),
        _row(p["ln1_g"]), _row(p["ln1_b"]),
        _row(p["ln2_g"]), _row(p["ln2_b"]),
        p["w_x_out"], _row(p["b_x_out"]),
        p["w_e_in"].T, _col(p["b_e_in"]),
        w_e12_t, b_e12_t,
        p["w_eo"].T, _col(p["b_eo"]),
        _col(p["lne_g"]), _col(p["lne_b"]),
        p["w_e_out"].T, _col(p["b_e_out"]),
    )

    def _const_spec(a):
        zeros = (0,) * a.ndim
        return pl.BlockSpec(a.shape, lambda i, z=zeros: z)

    in_specs = [
        pl.BlockSpec((1, n, dx), lambda i: (i, 0, 0)),
        pl.BlockSpec((1, de, nn), lambda i: (i, 0, 0)),
        pl.BlockSpec((1, 1, HX), lambda i: (i, 0, 0)),
    ] + [_const_spec(a) for a in weight_arrays]

    flops = 2 * b * (
        n * dx * HX + HX * HX + 3 * n * HX * HX + nn * de * HE
        + nn * HE * 2 * NH + 2 * (NH * nn * DH) + n * HX * HX
        + 2 * (n * HX * 2 * HX) + nn * NH * HE + n * HX * dx + nn * HE * de)
    bytes_accessed = int(
        sum(a.size * a.dtype.itemsize for a in (X, Et, temb_in) + weight_arrays)
        + 4 * (b * n * dx + b * de * nn))

    kern = functools.partial(_diffalign_fused_kernel, n=n, n_head=NH, d_head=DH)
    x_logits, e_logits_t = pl.pallas_call(
        kern,
        out_shape=(jax.ShapeDtypeStruct((b, n, dx), X.dtype),
                   jax.ShapeDtypeStruct((b, de, nn), X.dtype)),
        grid=(b,),
        in_specs=in_specs,
        out_specs=(pl.BlockSpec((1, n, dx), lambda i: (i, 0, 0)),
                   pl.BlockSpec((1, de, nn), lambda i: (i, 0, 0))),
        compiler_params=pltpu.CompilerParams(
            dimension_semantics=("parallel",),
            vmem_limit_bytes=32 * 1024 * 1024),
        cost_estimate=pl.CostEstimate(
            flops=flops,
            transcendentals=b * (NH * nn + nn),
            bytes_accessed=bytes_accessed),
    )(X, Et, temb_in, *weight_arrays)

    # un-pack lane-dense edge logits + symmetrize (layout plumbing, not compute)
    e_logits = e_logits_t.reshape(b, de, n, n).transpose(0, 2, 3, 1)
    e_logits = 0.5 * (e_logits + jnp.swapaxes(e_logits, 1, 2))
    return x_logits, e_logits


# ------------------------ pure-JAX reference (for check) --------------------
def _reference_forward(p, X, E, t_int):
    def lin(x, w, b_): return x @ w + b_
    def ln(x, g, b_):
        mu = x.mean(-1, keepdims=True)
        var = ((x - mu) ** 2).mean(-1, keepdims=True)
        return (x - mu) * jax.lax.rsqrt(var + 1e-5) * g + b_

    bv, nv = X.shape[0], X.shape[1]
    hX = lin(X, p["w_x_in"], p["b_x_in"])
    hE = lin(E, p["w_e_in"], p["b_e_in"])
    temb = jnp.maximum(lin(time_embedding(t_int, HX), p["w_t"], p["b_t"]), 0.0)
    hX = hX + temb[:, None, :]
    q = lin(hX, p["w_q"], p["b_q"]).reshape(bv, nv, NH, DH)
    k = lin(hX, p["w_k"], p["b_k"]).reshape(bv, nv, NH, DH)
    v = lin(hX, p["w_v"], p["b_v"]).reshape(bv, nv, NH, DH)
    e1 = lin(hE, p["w_e1"], p["b_e1"])
    e2 = lin(hE, p["w_e2"], p["b_e2"])
    sc = jnp.einsum("bnhd,bmhd->bhnm", q, k) / math.sqrt(DH)
    y = sc * (jnp.transpose(e1, (0, 3, 1, 2)) + 1.0) + jnp.transpose(e2, (0, 3, 1, 2))
    attn = jax.nn.softmax(y, axis=-1)
    ctx = jnp.einsum("bhnm,bmhd->bnhd", attn, v).reshape(bv, nv, NH * DH)
    hX = ln(hX + lin(ctx, p["w_o"], p["b_o"]), p["ln1_g"], p["ln1_b"])
    ff = jnp.maximum(lin(hX, p["w_ff1"], p["b_ff1"]), 0.0)
    hX = ln(hX + lin(ff, p["w_ff2"], p["b_ff2"]), p["ln2_g"], p["ln2_b"])
    y_bnnh = jnp.transpose(y, (0, 2, 3, 1))
    hE = ln(hE + lin(y_bnnh, p["w_eo"], p["b_eo"]), p["lne_g"], p["lne_b"])
    x_logits = lin(hX, p["w_x_out"], p["b_x_out"])
    e_logits = lin(hE, p["w_e_out"], p["b_e_out"])
    e_logits = 0.5 * (e_logits + jnp.swapaxes(e_logits, 1, 2))
    return x_logits, e_logits


def init_params(key):
    ks = iter(jax.random.split(key, 32))

    def dense(din, dout):
        w = (1.0 / math.sqrt(din)) * jax.random.normal(next(ks), (din, dout), jnp.float32)
        return w, jnp.zeros((dout,), jnp.float32)

    p = {}
    p["w_x_in"], p["b_x_in"] = dense(DX, HX)
    p["w_e_in"], p["b_e_in"] = dense(DE, HE)
    p["w_t"], p["b_t"] = dense(HX, HX)
    p["w_q"], p["b_q"] = dense(HX, HX)
    p["w_k"], p["b_k"] = dense(HX, HX)
    p["w_v"], p["b_v"] = dense(HX, HX)
    p["w_e1"], p["b_e1"] = dense(HE, NH)
    p["w_e2"], p["b_e2"] = dense(HE, NH)
    p["w_o"], p["b_o"] = dense(HX, HX)
    p["w_ff1"], p["b_ff1"] = dense(HX, 2 * HX)
    p["w_ff2"], p["b_ff2"] = dense(2 * HX, HX)
    p["w_eo"], p["b_eo"] = dense(NH, HE)
    p["w_x_out"], p["b_x_out"] = dense(HX, DX)
    p["w_e_out"], p["b_e_out"] = dense(HE, DE)
    p["ln1_g"], p["ln1_b"] = jnp.ones((HX,)), jnp.zeros((HX,))
    p["ln2_g"], p["ln2_b"] = jnp.ones((HX,)), jnp.zeros((HX,))
    p["lne_g"], p["lne_b"] = jnp.ones((HE,)), jnp.zeros((HE,))
    return p


if __name__ == "__main__":
    key = jax.random.PRNGKey(0)
    kx, ke, kt, kp = jax.random.split(key, 4)

    # dense one-hot graph (what turn_pyg_to_dense_graph would produce)
    node_ids = jax.random.randint(kx, (B, N), 0, DX)
    X = jax.nn.one_hot(node_ids, DX, dtype=jnp.float32)             # [2, 8, 10]
    edge_ids = jax.random.randint(ke, (B, N, N), 0, DE)
    edge_ids = jnp.maximum(edge_ids, jnp.swapaxes(edge_ids, 1, 2))  # symmetric
    E = jax.nn.one_hot(edge_ids, DE, dtype=jnp.float32)             # [2, 8, 8, 5]
    t = jax.random.randint(kt, (B,), 1, 1001)                       # timesteps

    params = init_params(kp)
    fwd = jax.jit(diffalign_forward)
    x_logits, e_logits = fwd(params, X, E, t)
    jax.block_until_ready((x_logits, e_logits))

    assert x_logits.shape == (B, N, DX)
    assert e_logits.shape == (B, N, N, DE)
    assert bool(jnp.all(jnp.isfinite(x_logits))) and bool(jnp.all(jnp.isfinite(e_logits)))

    # correctness vs. pure-JAX reference of the same denoiser math
    xr, er = jax.jit(_reference_forward)(params, X, E, t)
    assert bool(jnp.allclose(x_logits, xr, atol=1e-3, rtol=1e-3))
    assert bool(jnp.allclose(e_logits, er, atol=1e-3, rtol=1e-3))

    print("KERNEL_OK")
</pallas_src>

<mosaic_0001>
module attributes {stable_mosaic.version = 11 : i64} {
  func.func @_diffalign_fused_kernel(%arg0: i32, %arg1: memref<1x8x10xf32, #tpu.memory_space<vmem>>, %arg2: memref<1x5x64xf32, #tpu.memory_space<vmem>>, %arg3: memref<1x1x32xf32, #tpu.memory_space<vmem>>, %arg4: memref<10x32xf32, #tpu.memory_space<vmem>>, %arg5: memref<1x32xf32, #tpu.memory_space<vmem>>, %arg6: memref<32x32xf32, #tpu.memory_space<vmem>>, %arg7: memref<1x32xf32, #tpu.memory_space<vmem>>, %arg8: memref<12x32x8xf32, #tpu.memory_space<vmem>>, %arg9: memref<12x1x8xf32, #tpu.memory_space<vmem>>, %arg10: memref<4x8x32xf32, #tpu.memory_space<vmem>>, %arg11: memref<1x32xf32, #tpu.memory_space<vmem>>, %arg12: memref<32x64xf32, #tpu.memory_space<vmem>>, %arg13: memref<1x64xf32, #tpu.memory_space<vmem>>, %arg14: memref<64x32xf32, #tpu.memory_space<vmem>>, %arg15: memref<1x32xf32, #tpu.memory_space<vmem>>, %arg16: memref<1x32xf32, #tpu.memory_space<vmem>>, %arg17: memref<1x32xf32, #tpu.memory_space<vmem>>, %arg18: memref<1x32xf32, #tpu.memory_space<vmem>>, %arg19: memref<1x32xf32, #tpu.memory_space<vmem>>, %arg20: memref<32x10xf32, #tpu.memory_space<vmem>>, %arg21: memref<1x10xf32, #tpu.memory_space<vmem>>, %arg22: memref<16x5xf32, #tpu.memory_space<vmem>>, %arg23: memref<16x1xf32, #tpu.memory_space<vmem>>, %arg24: memref<8x16xf32, #tpu.memory_space<vmem>>, %arg25: memref<8x1xf32, #tpu.memory_space<vmem>>, %arg26: memref<16x4xf32, #tpu.memory_space<vmem>>, %arg27: memref<16x1xf32, #tpu.memory_space<vmem>>, %arg28: memref<16x1xf32, #tpu.memory_space<vmem>>, %arg29: memref<16x1xf32, #tpu.memory_space<vmem>>, %arg30: memref<5x16xf32, #tpu.memory_space<vmem>>, %arg31: memref<5x1xf32, #tpu.memory_space<vmem>>, %arg32: memref<1x8x10xf32, #tpu.memory_space<vmem>>, %arg33: memref<1x5x64xf32, #tpu.memory_space<vmem>>) attributes {dimension_semantics = [#tpu.dimension_semantics<parallel>], iteration_bounds = array<i64: 2>, scalar_prefetch = 0 : i64, scratch_operands = 0 : i64, tpu.core_type = #tpu.core_type<tc>, window_params = [{transform_indices = @transform_0, window_bounds = array<i64: 1, 8, 10>}, {transform_indices = @transform_1, window_bounds = array<i64: 1, 5, 64>}, {transform_indices = @transform_2, window_bounds = array<i64: 1, 1, 32>}, {pipeline_mode = #tpu.pipeline_mode<synchronous>, transform_indices = @transform_3, window_bounds = array<i64: 10, 32>}, {pipeline_mode = #tpu.pipeline_mode<synchronous>, transform_indices = @transform_4, window_bounds = array<i64: 1, 32>}, {pipeline_mode = #tpu.pipeline_mode<synchronous>, transform_indices = @transform_5, window_bounds = array<i64: 32, 32>}, {pipeline_mode = #tpu.pipeline_mode<synchronous>, transform_indices = @transform_6, window_bounds = array<i64: 1, 32>}, {pipeline_mode = #tpu.pipeline_mode<synchronous>, transform_indices = @transform_7, window_bounds = array<i64: 12, 32, 8>}, {pipeline_mode = #tpu.pipeline_mode<synchronous>, transform_indices = @transform_8, window_bounds = array<i64: 12, 1, 8>}, {pipeline_mode = #tpu.pipeline_mode<synchronous>, transform_indices = @transform_9, window_bounds = array<i64: 4, 8, 32>}, {pipeline_mode = #tpu.pipeline_mode<synchronous>, transform_indices = @transform_10, window_bounds = array<i64: 1, 32>}, {pipeline_mode = #tpu.pipeline_mode<synchronous>, transform_indices = @transform_11, window_bounds = array<i64: 32, 64>}, {pipeline_mode = #tpu.pipeline_mode<synchronous>, transform_indices = @transform_12, window_bounds = array<i64: 1, 64>}, {pipeline_mode = #tpu.pipeline_mode<synchronous>, transform_indices = @transform_13, window_bounds = array<i64: 64, 32>}, {pipeline_mode = #tpu.pipeline_mode<synchronous>, transform_indices = @transform_14, window_bounds = array<i64: 1, 32>}, {pipeline_mode = #tpu.pipeline_mode<synchronous>, transform_indices = @transform_15, window_bounds = array<i64: 1, 32>}, {pipeline_mode = #tpu.pipeline_mode<synchronous>, transform_indices = @transform_16, window_bounds = array<i64: 1, 32>}, {pipeline_mode = #tpu.pipeline_mode<synchronous>, transform_indices = @transform_17, window_bounds = array<i64: 1, 32>}, {pipeline_mode = #tpu.pipeline_mode<synchronous>, transform_indices = @transform_18, window_bounds = array<i64: 1, 32>}, {pipeline_mode = #tpu.pipeline_mode<synchronous>, transform_indices = @transform_19, window_bounds = array<i64: 32, 10>}, {pipeline_mode = #tpu.pipeline_mode<synchronous>, transform_indices = @transform_20, window_bounds = array<i64: 1, 10>}, {pipeline_mode = #tpu.pipeline_mode<synchronous>, transform_indices = @transform_21, window_bounds = array<i64: 16, 5>}, {pipeline_mode = #tpu.pipeline_mode<synchronous>, transform_indices = @transform_22, window_bounds = array<i64: 16, 1>}, {pipeline_mode = #tpu.pipeline_mode<synchronous>, transform_indices = @transform_23, window_bounds = array<i64: 8, 16>}, {pipeline_mode = #tpu.pipeline_mode<synchronous>, transform_indices = @transform_24, window_bounds = array<i64: 8, 1>}, {pipeline_mode = #tpu.pipeline_mode<synchronous>, transform_indices = @transform_25, window_bounds = array<i64: 16, 4>}, {pipeline_mode = #tpu.pipeline_mode<synchronous>, transform_indices = @transform_26, window_bounds = array<i64: 16, 1>}, {pipeline_mode = #tpu.pipeline_mode<synchronous>, transform_indices = @transform_27, window_bounds = array<i64: 16, 1>}, {pipeline_mode = #tpu.pipeline_mode<synchronous>, transform_indices = @transform_28, window_bounds = array<i64: 16, 1>}, {pipeline_mode = #tpu.pipeline_mode<synchronous>, transform_indices = @transform_29, window_bounds = array<i64: 5, 16>}, {pipeline_mode = #tpu.pipeline_mode<synchronous>, transform_indices = @transform_30, window_bounds = array<i64: 5, 1>}, {transform_indices = @transform_31, window_bounds = array<i64: 1, 8, 10>}, {transform_indices = @transform_32, window_bounds = array<i64: 1, 5, 64>}]} {
    %c0 = arith.constant 0 : index
    %c0_0 = arith.constant 0 : index
    %c0_1 = arith.constant 0 : index
    %0 = vector.load %arg1[%c0, %c0_0, %c0_1] : memref<1x8x10xf32, #tpu.memory_space<vmem>>, vector<1x8x10xf32>
    %1 = vector.shape_cast %0 : vector<1x8x10xf32> to vector<8x10xf32>
    %c0_2 = arith.constant 0 : index
    %c0_3 = arith.constant 0 : index
    %c0_4 = arith.constant 0 : index
    %2 = vector.load %arg2[%c0_2, %c0_3, %c0_4] : memref<1x5x64xf32, #tpu.memory_space<vmem>>, vector<1x5x64xf32>
    %3 = vector.shape_cast %2 : vector<1x5x64xf32> to vector<5x64xf32>
    %c0_5 = arith.constant 0 : index
    %c0_6 = arith.constant 0 : index
    %c0_7 = arith.constant 0 : index
    %4 = vector.load %arg3[%c0_5, %c0_6, %c0_7] : memref<1x1x32xf32, #tpu.memory_space<vmem>>, vector<1x1x32xf32>
    %5 = vector.shape_cast %4 : vector<1x1x32xf32> to vector<1x32xf32>
    %c0_8 = arith.constant 0 : index
    %c0_9 = arith.constant 0 : index
    %6 = vector.load %arg4[%c0_8, %c0_9] : memref<10x32xf32, #tpu.memory_space<vmem>>, vector<10x32xf32>
    %cst = arith.constant dense<0.000000e+00> : vector<8x32xf32>
    %7 = tpu.matmul %1, %6, %cst {dimension_numbers = #tpu.dot_dimension_numbers<[1], [0], [0], [1], [0, 0, 1, 1], [], []>} : vector<8x10xf32>, vector<10x32xf32>, vector<8x32xf32> -> vector<8x32xf32>
    %c0_10 = arith.constant 0 : index
    %c0_11 = arith.constant 0 : index
    %8 = vector.load %arg5[%c0_10, %c0_11] : memref<1x32xf32, #tpu.memory_space<vmem>>, vector<1x32xf32>
    %9 = vector.broadcast %8 : vector<1x32xf32> to vector<8x32xf32>
    %10 = arith.addf %7, %9 : vector<8x32xf32>
    %c0_12 = arith.constant 0 : index
    %c0_13 = arith.constant 0 : index
    %11 = vector.load %arg6[%c0_12, %c0_13] : memref<32x32xf32, #tpu.memory_space<vmem>>, vector<32x32xf32>
    %cst_14 = arith.constant dense<0.000000e+00> : vector<1x32xf32>
    %12 = tpu.matmul %5, %11, %cst_14 {dimension_numbers = #tpu.dot_dimension_numbers<[1], [0], [0], [1], [0, 0, 1, 1], [], []>} : vector<1x32xf32>, vector<32x32xf32>, vector<1x32xf32> -> vector<1x32xf32>
    %c0_15 = arith.constant 0 : index
    %c0_16 = arith.constant 0 : index
    %13 = vector.load %arg7[%c0_15, %c0_16] : memref<1x32xf32, #tpu.memory_space<vmem>>, vector<1x32xf32>
    %14 = arith.addf %12, %13 : vector<1x32xf32>
    %cst_17 = arith.constant 0.000000e+00 : f32
    %15 = vector.broadcast %cst_17 : f32 to vector<1x32xf32>
    %16 = arith.maximumf %14, %15 : vector<1x32xf32>
    %17 = vector.broadcast %16 : vector<1x32xf32> to vector<8x32xf32>
    %18 = arith.addf %10, %17 : vector<8x32xf32>
    %c0_18 = arith.constant 0 : index
    %c0_19 = arith.constant 0 : index
    %19 = vector.load %arg22[%c0_18, %c0_19] : memref<16x5xf32, #tpu.memory_space<vmem>>, vector<16x5xf32>
    %cst_20 = arith.constant dense<0.000000e+00> : vector<16x64xf32>
    %20 = tpu.matmul %19, %3, %cst_20 {dimension_numbers = #tpu.dot_dimension_numbers<[1], [0], [0], [1], [0, 0, 1, 1], [], []>} : vector<16x5xf32>, vector<5x64xf32>, vector<16x64xf32> -> vector<16x64xf32>
    %c0_21 = arith.constant 0 : index
    %c0_22 = arith.constant 0 : index
    %21 = vector.load %arg23[%c0_21, %c0_22] : memref<16x1xf32, #tpu.memory_space<vmem>>, vector<16x1xf32>
    %22 = vector.broadcast %21 : vector<16x1xf32> to vector<16x64xf32>
    %23 = arith.addf %20, %22 : vector<16x64xf32>
    %24 = vector.shape_cast %18 : vector<8x32xf32> to vector<1x8x32xf32>
    %25 = vector.broadcast %24 : vector<1x8x32xf32> to vector<12x8x32xf32>
    %c0_23 = arith.constant 0 : index
    %c0_24 = arith.constant 0 : index
    %c0_25 = arith.constant 0 : index
    %26 = vector.load %arg8[%c0_23, %c0_24, %c0_25] : memref<12x32x8xf32, #tpu.memory_space<vmem>>, vector<12x32x8xf32>
    "tpu.trace_start"() <{level = 10 : i32, message = "hnc,hcd->hnd"}> : () -> ()
    %cst_26 = arith.constant dense<0.000000e+00> : vector<12x8x8xf32>
    %27 = tpu.matmul %25, %26, %cst_26 {dimension_numbers = #tpu.dot_dimension_numbers<[2], [1], [1], [2], [0, 0, 0, 1, 1, 2], [0], [0]>} : vector<12x8x32xf32>, vector<12x32x8xf32>, vector<12x8x8xf32> -> vector<12x8x8xf32>
    "tpu.trace_stop"() : () -> ()
    %c0_27 = arith.constant 0 : index
    %c0_28 = arith.constant 0 : index
    %c0_29 = arith.constant 0 : index
    %28 = vector.load %arg9[%c0_27, %c0_28, %c0_29] : memref<12x1x8xf32, #tpu.memory_space<vmem>>, vector<12x1x8xf32>
    %29 = vector.broadcast %28 : vector<12x1x8xf32> to vector<12x8x8xf32>
    %30 = arith.addf %27, %29 : vector<12x8x8xf32>
    %31 = vector.extract_strided_slice %30 {offsets = [0, 0, 0], sizes = [4, 8, 8], strides = [1, 1, 1]} : vector<12x8x8xf32> to vector<4x8x8xf32>
    %32 = vector.extract_strided_slice %30 {offsets = [4, 0, 0], sizes = [4, 8, 8], strides = [1, 1, 1]} : vector<12x8x8xf32> to vector<4x8x8xf32>
    %33 = vector.extract_strided_slice %30 {offsets = [8, 0, 0], sizes = [4, 8, 8], strides = [1, 1, 1]} : vector<12x8x8xf32> to vector<4x8x8xf32>
    %c0_30 = arith.constant 0 : index
    %c0_31 = arith.constant 0 : index
    %34 = vector.load %arg24[%c0_30, %c0_31] : memref<8x16xf32, #tpu.memory_space<vmem>>, vector<8x16xf32>
    %cst_32 = arith.constant dense<0.000000e+00> : vector<8x64xf32>
    %35 = tpu.matmul %34, %23, %cst_32 {dimension_numbers = #tpu.dot_dimension_numbers<[1], [0], [0], [1], [0, 0, 1, 1], [], []>} : vector<8x16xf32>, vector<16x64xf32>, vector<8x64xf32> -> vector<8x64xf32>
    %c0_33 = arith.constant 0 : index
    %c0_34 = arith.constant 0 : index
    %36 = vector.load %arg25[%c0_33, %c0_34] : memref<8x1xf32, #tpu.memory_space<vmem>>, vector<8x1xf32>
    %37 = vector.broadcast %36 : vector<8x1xf32> to vector<8x64xf32>
    %38 = arith.addf %35, %37 : vector<8x64xf32>
    "tpu.trace_start"() <{level = 10 : i32, message = "hnd,hmd->hnm"}> : () -> ()
    %cst_35 = arith.constant dense<0.000000e+00> : vector<4x8x8xf32>
    %39 = tpu.matmul %31, %32, %cst_35 {dimension_numbers = #tpu.dot_dimension_numbers<[2], [2], [1], [1], [0, 0, 0, 1, 1, 1], [0], [0]>} : vector<4x8x8xf32>, vector<4x8x8xf32>, vector<4x8x8xf32> -> vector<4x8x8xf32>
    "tpu.trace_stop"() : () -> ()
    %cst_36 = arith.constant 0.353553385 : f32
    %40 = vector.broadcast %cst_36 : f32 to vector<4x8x8xf32>
    %41 = arith.mulf %39, %40 : vector<4x8x8xf32>
    %42 = vector.shape_cast %41 : vector<4x8x8xf32> to vector<4x64xf32>
    %43 = vector.extract_strided_slice %38 {offsets = [0, 0], sizes = [4, 64], strides = [1, 1]} : vector<8x64xf32> to vector<4x64xf32>
    %cst_37 = arith.constant 1.000000e+00 : f32
    %44 = vector.broadcast %cst_37 : f32 to vector<4x64xf32>
    %45 = arith.addf %43, %44 : vector<4x64xf32>
    %46 = arith.mulf %42, %45 : vector<4x64xf32>
    %47 = vector.extract_strided_slice %38 {offsets = [4, 0], sizes = [4, 64], strides = [1, 1]} : vector<8x64xf32> to vector<4x64xf32>
    %48 = arith.addf %46, %47 : vector<4x64xf32>
    %49 = vector.shape_cast %48 : vector<4x64xf32> to vector<4x8x8xf32>
    %cst_38 = arith.constant dense<0xFF800000> : vector<4x8xf32>
    %50 = vector.multi_reduction <maximumf>, %49, %cst_38 [2] : vector<4x8x8xf32> to vector<4x8xf32>
    %51 = vector.shape_cast %50 : vector<4x8xf32> to vector<4x8x1xf32>
    %52 = vector.broadcast %51 : vector<4x8x1xf32> to vector<4x8x8xf32>
    %53 = arith.subf %49, %52 : vector<4x8x8xf32>
    %54 = math.exp %53 : vector<4x8x8xf32>
    %cst_39 = arith.constant dense<0.000000e+00> : vector<4x8xf32>
    %55 = vector.multi_reduction <add>, %54, %cst_39 [2] : vector<4x8x8xf32> to vector<4x8xf32>
    %56 = vector.shape_cast %55 : vector<4x8xf32> to vector<4x8x1xf32>
    %57 = vector.broadcast %56 : vector<4x8x1xf32> to vector<4x8x8xf32>
    %58 = arith.divf %54, %57 : vector<4x8x8xf32>
    "tpu.trace_start"() <{level = 10 : i32, message = "hnm,hmd->hnd"}> : () -> ()
    %cst_40 = arith.constant dense<0.000000e+00> : vector<4x8x8xf32>
    %59 = tpu.matmul %58, %33, %cst_40 {dimension_numbers = #tpu.dot_dimension_numbers<[2], [1], [1], [2], [0, 0, 0, 1, 1, 2], [0], [0]>} : vector<4x8x8xf32>, vector<4x8x8xf32>, vector<4x8x8xf32> -> vector<4x8x8xf32>
    "tpu.trace_stop"() : () -> ()
    %c0_41 = arith.constant 0 : index
    %c0_42 = arith.constant 0 : index
    %c0_43 = arith.constant 0 : index
    %60 = vector.load %arg10[%c0_41, %c0_42, %c0_43] : memref<4x8x32xf32, #tpu.memory_space<vmem>>, vector<4x8x32xf32>
    "tpu.trace_start"() <{level = 10 : i32, message = "hnd,hdc->hnc"}> : () -> ()
    %cst_44 = arith.constant dense<0.000000e+00> : vector<4x8x32xf32>
    %61 = tpu.matmul %59, %60, %cst_44 {dimension_numbers = #tpu.dot_dimension_numbers<[2], [1], [1], [2], [0, 0, 0, 1, 1, 2], [0], [0]>} : vector<4x8x8xf32>, vector<4x8x32xf32>, vector<4x8x32xf32> -> vector<4x8x32xf32>
    "tpu.trace_stop"() : () -> ()
    %cst_45 = arith.constant dense<0.000000e+00> : vector<8x32xf32>
    %62 = vector.multi_reduction <add>, %61, %cst_45 [0] : vector<4x8x32xf32> to vector<8x32xf32>
    %c0_46 = arith.constant 0 : index
    %c0_47 = arith.constant 0 : index
    %63 = vector.load %arg11[%c0_46, %c0_47] : memref<1x32xf32, #tpu.memory_space<vmem>>, vector<1x32xf32>
    %64 = vector.broadcast %63 : vector<1x32xf32> to vector<8x32xf32>
    %65 = arith.addf %62, %64 : vector<8x32xf32>
    %66 = arith.addf %18, %65 : vector<8x32xf32>
    %c0_48 = arith.constant 0 : index
    %c0_49 = arith.constant 0 : index
    %67 = vector.load %arg16[%c0_48, %c0_49] : memref<1x32xf32, #tpu.memory_space<vmem>>, vector<1x32xf32>
    %c0_50 = arith.constant 0 : index
    %c0_51 = arith.constant 0 : index
    %68 = vector.load %arg17[%c0_50, %c0_51] : memref<1x32xf32, #tpu.memory_space<vmem>>, vector<1x32xf32>
    %cst_52 = arith.constant dense<0.000000e+00> : vector<8xf32>
    %69 = vector.multi_reduction <add>, %66, %cst_52 [1] : vector<8x32xf32> to vector<8xf32>
    %70 = vector.shape_cast %69 : vector<8xf32> to vector<8x1xf32>
    %cst_53 = arith.constant 3.200000e+01 : f32
    %71 = vector.broadcast %cst_53 : f32 to vector<8x1xf32>
    %72 = arith.divf %70, %71 : vector<8x1xf32>
    %73 = vector.broadcast %72 : vector<8x1xf32> to vector<8x32xf32>
    %74 = arith.subf %66, %73 : vector<8x32xf32>
    %75 = arith.mulf %74, %74 : vector<8x32xf32>
    %cst_54 = arith.constant dense<0.000000e+00> : vector<8xf32>
    %76 = vector.multi_reduction <add>, %75, %cst_54 [1] : vector<8x32xf32> to vector<8xf32>
    %77 = vector.shape_cast %76 : vector<8xf32> to vector<8x1xf32>
    %cst_55 = arith.constant 3.200000e+01 : f32
    %78 = vector.broadcast %cst_55 : f32 to vector<8x1xf32>
    %79 = arith.divf %77, %78 : vector<8x1xf32>
    %80 = vector.broadcast %72 : vector<8x1xf32> to vector<8x32xf32>
    %81 = arith.subf %66, %80 : vector<8x32xf32>
    %cst_56 = arith.constant 9.99999974E-6 : f32
    %82 = vector.broadcast %cst_56 : f32 to vector<8x1xf32>
    %83 = arith.addf %79, %82 : vector<8x1xf32>
    %84 = math.rsqrt %83 : vector<8x1xf32>
    %85 = vector.broadcast %84 : vector<8x1xf32> to vector<8x32xf32>
    %86 = arith.mulf %81, %85 : vector<8x32xf32>
    %87 = vector.broadcast %67 : vector<1x32xf32> to vector<8x32xf32>
    %88 = arith.mulf %86, %87 : vector<8x32xf32>
    %89 = vector.broadcast %68 : vector<1x32xf32> to vector<8x32xf32>
    %90 = arith.addf %88, %89 : vector<8x32xf32>
    %c0_57 = arith.constant 0 : index
    %c0_58 = arith.constant 0 : index
    %91 = vector.load %arg12[%c0_57, %c0_58] : memref<32x64xf32, #tpu.memory_space<vmem>>, vector<32x64xf32>
    %cst_59 = arith.constant dense<0.000000e+00> : vector<8x64xf32>
    %92 = tpu.matmul %90, %91, %cst_59 {dimension_numbers = #tpu.dot_dimension_numbers<[1], [0], [0], [1], [0, 0, 1, 1], [], []>} : vector<8x32xf32>, vector<32x64xf32>, vector<8x64xf32> -> vector<8x64xf32>
    %c0_60 = arith.constant 0 : index
    %c0_61 = arith.constant 0 : index
    %93 = vector.load %arg13[%c0_60, %c0_61] : memref<1x64xf32, #tpu.memory_space<vmem>>, vector<1x64xf32>
    %94 = vector.broadcast %93 : vector<1x64xf32> to vector<8x64xf32>
    %95 = arith.addf %92, %94 : vector<8x64xf32>
    %cst_62 = arith.constant 0.000000e+00 : f32
    %96 = vector.broadcast %cst_62 : f32 to vector<8x64xf32>
    %97 = arith.maximumf %95, %96 : vector<8x64xf32>
    %c0_63 = arith.constant 0 : index
    %c0_64 = arith.constant 0 : index
    %98 = vector.load %arg14[%c0_63, %c0_64] : memref<64x32xf32, #tpu.memory_space<vmem>>, vector<64x32xf32>
    %cst_65 = arith.constant dense<0.000000e+00> : vector<8x32xf32>
    %99 = tpu.matmul %97, %98, %cst_65 {dimension_numbers = #tpu.dot_dimension_numbers<[1], [0], [0], [1], [0, 0, 1, 1], [], []>} : vector<8x64xf32>, vector<64x32xf32>, vector<8x32xf32> -> vector<8x32xf32>
    %c0_66 = arith.constant 0 : index
    %c0_67 = arith.constant 0 : index
    %100 = vector.load %arg15[%c0_66, %c0_67] : memref<1x32xf32, #tpu.memory_space<vmem>>, vector<1x32xf32>
    %101 = vector.broadcast %100 : vector<1x32xf32> to vector<8x32xf32>
    %102 = arith.addf %99, %101 : vector<8x32xf32>
    %103 = arith.addf %90, %102 : vector<8x32xf32>
    %c0_68 = arith.constant 0 : index
    %c0_69 = arith.constant 0 : index
    %104 = vector.load %arg18[%c0_68, %c0_69] : memref<1x32xf32, #tpu.memory_space<vmem>>, vector<1x32xf32>
    %c0_70 = arith.constant 0 : index
    %c0_71 = arith.constant 0 : index
    %105 = vector.load %arg19[%c0_70, %c0_71] : memref<1x32xf32, #tpu.memory_space<vmem>>, vector<1x32xf32>
    %cst_72 = arith.constant dense<0.000000e+00> : vector<8xf32>
    %106 = vector.multi_reduction <add>, %103, %cst_72 [1] : vector<8x32xf32> to vector<8xf32>
    %107 = vector.shape_cast %106 : vector<8xf32> to vector<8x1xf32>
    %cst_73 = arith.constant 3.200000e+01 : f32
    %108 = vector.broadcast %cst_73 : f32 to vector<8x1xf32>
    %109 = arith.divf %107, %108 : vector<8x1xf32>
    %110 = vector.broadcast %109 : vector<8x1xf32> to vector<8x32xf32>
    %111 = arith.subf %103, %110 : vector<8x32xf32>
    %112 = arith.mulf %111, %111 : vector<8x32xf32>
    %cst_74 = arith.constant dense<0.000000e+00> : vector<8xf32>
    %113 = vector.multi_reduction <add>, %112, %cst_74 [1] : vector<8x32xf32> to vector<8xf32>
    %114 = vector.shape_cast %113 : vector<8xf32> to vector<8x1xf32>
    %cst_75 = arith.constant 3.200000e+01 : f32
    %115 = vector.broadcast %cst_75 : f32 to vector<8x1xf32>
    %116 = arith.divf %114, %115 : vector<8x1xf32>
    %117 = vector.broadcast %109 : vector<8x1xf32> to vector<8x32xf32>
    %118 = arith.subf %103, %117 : vector<8x32xf32>
    %cst_76 = arith.constant 9.99999974E-6 : f32
    %119 = vector.broadcast %cst_76 : f32 to vector<8x1xf32>
    %120 = arith.addf %116, %119 : vector<8x1xf32>
    %121 = math.rsqrt %120 : vector<8x1xf32>
    %122 = vector.broadcast %121 : vector<8x1xf32> to vector<8x32xf32>
    %123 = arith.mulf %118, %122 : vector<8x32xf32>
    %124 = vector.broadcast %104 : vector<1x32xf32> to vector<8x32xf32>
    %125 = arith.mulf %123, %124 : vector<8x32xf32>
    %126 = vector.broadcast %105 : vector<1x32xf32> to vector<8x32xf32>
    %127 = arith.addf %125, %126 : vector<8x32xf32>
    %c0_77 = arith.constant 0 : index
    %c0_78 = arith.constant 0 : index
    %128 = vector.load %arg26[%c0_77, %c0_78] : memref<16x4xf32, #tpu.memory_space<vmem>>, vector<16x4xf32>
    %cst_79 = arith.constant dense<0.000000e+00> : vector<16x64xf32>
    %129 = tpu.matmul %128, %48, %cst_79 {dimension_numbers = #tpu.dot_dimension_numbers<[1], [0], [0], [1], [0, 0, 1, 1], [], []>} : vector<16x4xf32>, vector<4x64xf32>, vector<16x64xf32> -> vector<16x64xf32>
    %c0_80 = arith.constant 0 : index
    %c0_81 = arith.constant 0 : index
    %130 = vector.load %arg27[%c0_80, %c0_81] : memref<16x1xf32, #tpu.memory_space<vmem>>, vector<16x1xf32>
    %131 = vector.broadcast %130 : vector<16x1xf32> to vector<16x64xf32>
    %132 = arith.addf %129, %131 : vector<16x64xf32>
    %133 = arith.addf %23, %132 : vector<16x64xf32>
    %cst_82 = arith.constant dense<0.000000e+00> : vector<64xf32>
    %134 = vector.multi_reduction <add>, %133, %cst_82 [0] : vector<16x64xf32> to vector<64xf32>
    %135 = vector.shape_cast %134 : vector<64xf32> to vector<1x64xf32>
    %cst_83 = arith.constant 1.600000e+01 : f32
    %136 = vector.broadcast %cst_83 : f32 to vector<1x64xf32>
    %137 = arith.divf %135, %136 : vector<1x64xf32>
    %138 = vector.broadcast %137 : vector<1x64xf32> to vector<16x64xf32>
    %139 = arith.subf %133, %138 : vector<16x64xf32>
    %140 = arith.mulf %139, %139 : vector<16x64xf32>
    %cst_84 = arith.constant dense<0.000000e+00> : vector<64xf32>
    %141 = vector.multi_reduction <add>, %140, %cst_84 [0] : vector<16x64xf32> to vector<64xf32>
    %142 = vector.shape_cast %141 : vector<64xf32> to vector<1x64xf32>
    %cst_85 = arith.constant 1.600000e+01 : f32
    %143 = vector.broadcast %cst_85 : f32 to vector<1x64xf32>
    %144 = arith.divf %142, %143 : vector<1x64xf32>
    %145 = vector.broadcast %137 : vector<1x64xf32> to vector<16x64xf32>
    %146 = arith.subf %133, %145 : vector<16x64xf32>
    %cst_86 = arith.constant 9.99999974E-6 : f32
    %147 = vector.broadcast %cst_86 : f32 to vector<1x64xf32>
    %148 = arith.addf %144, %147 : vector<1x64xf32>
    %149 = math.rsqrt %148 : vector<1x64xf32>
    %150 = vector.broadcast %149 : vector<1x64xf32> to vector<16x64xf32>
    %151 = arith.mulf %146, %150 : vector<16x64xf32>
    %c0_87 = arith.constant 0 : index
    %c0_88 = arith.constant 0 : index
    %152 = vector.load %arg28[%c0_87, %c0_88] : memref<16x1xf32, #tpu.memory_space<vmem>>, vector<16x1xf32>
    %153 = vector.broadcast %152 : vector<16x1xf32> to vector<16x64xf32>
    %154 = arith.mulf %151, %153 : vector<16x64xf32>
    %c0_89 = arith.constant 0 : index
    %c0_90 = arith.constant 0 : index
    %155 = vector.load %arg29[%c0_89, %c0_90] : memref<16x1xf32, #tpu.memory_space<vmem>>, vector<16x1xf32>
    %156 = vector.broadcast %155 : vector<16x1xf32> to vector<16x64xf32>
    %157 = arith.addf %154, %156 : vector<16x64xf32>
    %c0_91 = arith.constant 0 : index
    %c0_92 = arith.constant 0 : index
    %158 = vector.load %arg20[%c0_91, %c0_92] : memref<32x10xf32, #tpu.memory_space<vmem>>, vector<32x10xf32>
    %cst_93 = arith.constant dense<0.000000e+00> : vector<8x10xf32>
    %159 = tpu.matmul %127, %158, %cst_93 {dimension_numbers = #tpu.dot_dimension_numbers<[1], [0], [0], [1], [0, 0, 1, 1], [], []>} : vector<8x32xf32>, vector<32x10xf32>, vector<8x10xf32> -> vector<8x10xf32>
    %c0_94 = arith.constant 0 : index
    %c0_95 = arith.constant 0 : index
    %160 = vector.load %arg21[%c0_94, %c0_95] : memref<1x10xf32, #tpu.memory_space<vmem>>, vector<1x10xf32>
    %161 = vector.broadcast %160 : vector<1x10xf32> to vector<8x10xf32>
    %162 = arith.addf %159, %161 : vector<8x10xf32>
    %c0_96 = arith.constant 0 : index
    %c0_97 = arith.constant 0 : index
    %c0_98 = arith.constant 0 : index
    %163 = vector.load %arg32[%c0_96, %c0_97, %c0_98] : memref<1x8x10xf32, #tpu.memory_space<vmem>>, vector<1x8x10xf32>
    %164 = vector.shape_cast %163 : vector<1x8x10xf32> to vector<8x10xf32>
    %165 = vector.shape_cast %162 : vector<8x10xf32> to vector<1x8x10xf32>
    tpu.vector_store %arg32[%c0_96, %c0_97, %c0_98], %165 {strides = array<i32>} : memref<1x8x10xf32, #tpu.memory_space<vmem>>, vector<1x8x10xf32>,
    %c0_99 = arith.constant 0 : index
    %c0_100 = arith.constant 0 : index
    %166 = vector.load %arg30[%c0_99, %c0_100] : memref<5x16xf32, #tpu.memory_space<vmem>>, vector<5x16xf32>
    %cst_101 = arith.constant dense<0.000000e+00> : vector<5x64xf32>
    %167 = tpu.matmul %166, %157, %cst_101 {dimension_numbers = #tpu.dot_dimension_numbers<[1], [0], [0], [1], [0, 0, 1, 1], [], []>} : vector<5x16xf32>, vector<16x64xf32>, vector<5x64xf32> -> vector<5x64xf32>
    %c0_102 = arith.constant 0 : index
    %c0_103 = arith.constant 0 : index
    %168 = vector.load %arg31[%c0_102, %c0_103] : memref<5x1xf32, #tpu.memory_space<vmem>>, vector<5x1xf32>
    %169 = vector.broadcast %168 : vector<5x1xf32> to vector<5x64xf32>
    %170 = arith.addf %167, %169 : vector<5x64xf32>
    %c0_104 = arith.constant 0 : index
    %c0_105 = arith.constant 0 : index
    %c0_106 = arith.constant 0 : index
    %171 = vector.load %arg33[%c0_104, %c0_105, %c0_106] : memref<1x5x64xf32, #tpu.memory_space<vmem>>, vector<1x5x64xf32>
    %172 = vector.shape_cast %171 : vector<1x5x64xf32> to vector<5x64xf32>
    %173 = vector.shape_cast %170 : vector<5x64xf32> to vector<1x5x64xf32>
    tpu.vector_store %arg33[%c0_104, %c0_105, %c0_106], %173 {strides = array<i32>} : memref<1x5x64xf32, #tpu.memory_space<vmem>>, vector<1x5x64xf32>,
    return
  }
  func.func @transform_0(%arg0: i32) -> (i32, i32, i32) {
    %c0_i32 = arith.constant 0 : i32
    %c0_i32_0 = arith.constant 0 : i32
    %c0_i32_1 = arith.constant 0 : i32
    return %arg0, %c0_i32, %c0_i32_0 : i32, i32, i32
  }
  func.func @transform_1(%arg0: i32) -> (i32, i32, i32) {
    %c0_i32 = arith.constant 0 : i32
    %c0_i32_0 = arith.constant 0 : i32
    %c0_i32_1 = arith.constant 0 : i32
    return %arg0, %c0_i32, %c0_i32_0 : i32, i32, i32
  }
  func.func @transform_2(%arg0: i32) -> (i32, i32, i32) {
    %c0_i32 = arith.constant 0 : i32
    %c0_i32_0 = arith.constant 0 : i32
    %c0_i32_1 = arith.constant 0 : i32
    return %arg0, %c0_i32, %c0_i32_0 : i32, i32, i32
  }
  func.func @transform_3(%arg0: i32) -> (i32, i32) {
    %c0_i32 = arith.constant 0 : i32
    %c0_i32_0 = arith.constant 0 : i32
    %c0_i32_1 = arith.constant 0 : i32
    return %c0_i32, %c0_i32_0 : i32, i32
  }
  func.func @transform_4(%arg0: i32) -> (i32, i32) {
    %c0_i32 = arith.constant 0 : i32
    %c0_i32_0 = arith.constant 0 : i32
    %c0_i32_1 = arith.constant 0 : i32
    return %c0_i32, %c0_i32_0 : i32, i32
  }
  func.func @transform_5(%arg0: i32) -> (i32, i32) {
    %c0_i32 = arith.constant 0 : i32
    %c0_i32_0 = arith.constant 0 : i32
    %c0_i32_1 = arith.constant 0 : i32
    return %c0_i32, %c0_i32_0 : i32, i32
  }
  func.func @transform_6(%arg0: i32) -> (i32, i32) {
    %c0_i32 = arith.constant 0 : i32
    %c0_i32_0 = arith.constant 0 : i32
    %c0_i32_1 = arith.constant 0 : i32
    return %c0_i32, %c0_i32_0 : i32, i32
  }
  func.func @transform_7(%arg0: i32) -> (i32, i32, i32) {
    %c0_i32 = arith.constant 0 : i32
    %c0_i32_0 = arith.constant 0 : i32
    %c0_i32_1 = arith.constant 0 : i32
    %c0_i32_2 = arith.constant 0 : i32
    return %c0_i32, %c0_i32_0, %c0_i32_1 : i32, i32, i32
  }
  func.func @transform_8(%arg0: i32) -> (i32, i32, i32) {
    %c0_i32 = arith.constant 0 : i32
    %c0_i32_0 = arith.constant 0 : i32
    %c0_i32_1 = arith.constant 0 : i32
    %c0_i32_2 = arith.constant 0 : i32
    return %c0_i32, %c0_i32_0, %c0_i32_1 : i32, i32, i32
  }
  func.func @transform_9(%arg0: i32) -> (i32, i32, i32) {
    %c0_i32 = arith.constant 0 : i32
    %c0_i32_0 = arith.constant 0 : i32
    %c0_i32_1 = arith.constant 0 : i32
    %c0_i32_2 = arith.constant 0 : i32
    return %c0_i32, %c0_i32_0, %c0_i32_1 : i32, i32, i32
  }
  func.func @transform_10(%arg0: i32) -> (i32, i32) {
    %c0_i32 = arith.constant 0 : i32
    %c0_i32_0 = arith.constant 0 : i32
    %c0_i32_1 = arith.constant 0 : i32
    return %c0_i32, %c0_i32_0 : i32, i32
  }
  func.func @transform_11(%arg0: i32) -> (i32, i32) {
    %c0_i32 = arith.constant 0 : i32
    %c0_i32_0 = arith.constant 0 : i32
    %c0_i32_1 = arith.constant 0 : i32
    return %c0_i32, %c0_i32_0 : i32, i32
  }
  func.func @transform_12(%arg0: i32) -> (i32, i32) {
    %c0_i32 = arith.constant 0 : i32
    %c0_i32_0 = arith.constant 0 : i32
    %c0_i32_1 = arith.constant 0 : i32
    return %c0_i32, %c0_i32_0 : i32, i32
  }
  func.func @transform_13(%arg0: i32) -> (i32, i32) {
    %c0_i32 = arith.constant 0 : i32
    %c0_i32_0 = arith.constant 0 : i32
    %c0_i32_1 = arith.constant 0 : i32
    return %c0_i32, %c0_i32_0 : i32, i32
  }
  func.func @transform_14(%arg0: i32) -> (i32, i32) {
    %c0_i32 = arith.constant 0 : i32
    %c0_i32_0 = arith.constant 0 : i32
    %c0_i32_1 = arith.constant 0 : i32
    return %c0_i32, %c0_i32_0 : i32, i32
  }
  func.func @transform_15(%arg0: i32) -> (i32, i32) {
    %c0_i32 = arith.constant 0 : i32
    %c0_i32_0 = arith.constant 0 : i32
    %c0_i32_1 = arith.constant 0 : i32
    return %c0_i32, %c0_i32_0 : i32, i32
  }
  func.func @transform_16(%arg0: i32) -> (i32, i32) {
    %c0_i32 = arith.constant 0 : i32
    %c0_i32_0 = arith.constant 0 : i32
    %c0_i32_1 = arith.constant 0 : i32
    return %c0_i32, %c0_i32_0 : i32, i32
  }
  func.func @transform_17(%arg0: i32) -> (i32, i32) {
    %c0_i32 = arith.constant 0 : i32
    %c0_i32_0 = arith.constant 0 : i32
    %c0_i32_1 = arith.constant 0 : i32
    return %c0_i32, %c0_i32_0 : i32, i32
  }
  func.func @transform_18(%arg0: i32) -> (i32, i32) {
    %c0_i32 = arith.constant 0 : i32
    %c0_i32_0 = arith.constant 0 : i32
    %c0_i32_1 = arith.constant 0 : i32
    return %c0_i32, %c0_i32_0 : i32, i32
  }
  func.func @transform_19(%arg0: i32) -> (i32, i32) {
    %c0_i32 = arith.constant 0 : i32
    %c0_i32_0 = arith.constant 0 : i32
    %c0_i32_1 = arith.constant 0 : i32
    return %c0_i32, %c0_i32_0 : i32, i32
  }
  func.func @transform_20(%arg0: i32) -> (i32, i32) {
    %c0_i32 = arith.constant 0 : i32
    %c0_i32_0 = arith.constant 0 : i32
    %c0_i32_1 = arith.constant 0 : i32
    return %c0_i32, %c0_i32_0 : i32, i32
  }
  func.func @transform_21(%arg0: i32) -> (i32, i32) {
    %c0_i32 = arith.constant 0 : i32
    %c0_i32_0 = arith.constant 0 : i32
    %c0_i32_1 = arith.constant 0 : i32
    return %c0_i32, %c0_i32_0 : i32, i32
  }
  func.func @transform_22(%arg0: i32) -> (i32, i32) {
    %c0_i32 = arith.constant 0 : i32
    %c0_i32_0 = arith.constant 0 : i32
    %c0_i32_1 = arith.constant 0 : i32
    return %c0_i32, %c0_i32_0 : i32, i32
  }
  func.func @transform_23(%arg0: i32) -> (i32, i32) {
    %c0_i32 = arith.constant 0 : i32
    %c0_i32_0 = arith.constant 0 : i32
    %c0_i32_1 = arith.constant 0 : i32
    return %c0_i32, %c0_i32_0 : i32, i32
  }
  func.func @transform_24(%arg0: i32) -> (i32, i32) {
    %c0_i32 = arith.constant 0 : i32
    %c0_i32_0 = arith.constant 0 : i32
    %c0_i32_1 = arith.constant 0 : i32
    return %c0_i32, %c0_i32_0 : i32, i32
  }
  func.func @transform_25(%arg0: i32) -> (i32, i32) {
    %c0_i32 = arith.constant 0 : i32
    %c0_i32_0 = arith.constant 0 : i32
    %c0_i32_1 = arith.constant 0 : i32
    return %c0_i32, %c0_i32_0 : i32, i32
  }
  func.func @transform_26(%arg0: i32) -> (i32, i32) {
    %c0_i32 = arith.constant 0 : i32
    %c0_i32_0 = arith.constant 0 : i32
    %c0_i32_1 = arith.constant 0 : i32
    return %c0_i32, %c0_i32_0 : i32, i32
  }
  func.func @transform_27(%arg0: i32) -> (i32, i32) {
    %c0_i32 = arith.constant 0 : i32
    %c0_i32_0 = arith.constant 0 : i32
    %c0_i32_1 = arith.constant 0 : i32
    return %c0_i32, %c0_i32_0 : i32, i32
  }
  func.func @transform_28(%arg0: i32) -> (i32, i32) {
    %c0_i32 = arith.constant 0 : i32
    %c0_i32_0 = arith.constant 0 : i32
    %c0_i32_1 = arith.constant 0 : i32
    return %c0_i32, %c0_i32_0 : i32, i32
  }
  func.func @transform_29(%arg0: i32) -> (i32, i32) {
    %c0_i32 = arith.constant 0 : i32
    %c0_i32_0 = arith.constant 0 : i32
    %c0_i32_1 = arith.constant 0 : i32
    return %c0_i32, %c0_i32_0 : i32, i32
  }
  func.func @transform_30(%arg0: i32) -> (i32, i32) {
    %c0_i32 = arith.constant 0 : i32
    %c0_i32_0 = arith.constant 0 : i32
    %c0_i32_1 = arith.constant 0 : i32
    return %c0_i32, %c0_i32_0 : i32, i32
  }
  func.func @transform_31(%arg0: i32) -> (i32, i32, i32) {
    %c0_i32 = arith.constant 0 : i32
    %c0_i32_0 = arith.constant 0 : i32
    %c0_i32_1 = arith.constant 0 : i32
    return %arg0, %c0_i32, %c0_i32_0 : i32, i32, i32
  }
  func.func @transform_32(%arg0: i32) -> (i32, i32, i32) {
    %c0_i32 = arith.constant 0 : i32
    %c0_i32_0 = arith.constant 0 : i32
    %c0_i32_1 = arith.constant 0 : i32
    return %arg0, %c0_i32, %c0_i32_0 : i32, i32, i32
  }
}

</mosaic_0001>

<bundles_post_ra>
// kernel: diffalign_forward.1
= control target key start
LH: loop header
LB: loop body
LE: loop exit
PB: predicated region body
PF: predicated region fallthrough
CT: control target
= control target key end

     0   :  { %s4996_s6 = smov 1   ;;  %s4997_s10 = smov 2   ;;  %s5682_s0 = inlined_call_operand.smem [shape: u32[33], index: -1, kind: input, shape index: {}] }
   0x1   :  { %s5058_s5 = sld [smem:[%s5682_s0]]   ;;  %s4998_s14 = smov 3  }
   0x2   :  { %s5063_s9 = sld [smem:[%s5682_s0 + %s4996_s6]]   ;;  %s4999_s18 = smov 4  }
   0x3   :  { %s5068_s13 = sld [smem:[%s5682_s0 + %s4997_s10]]   ;;  %s5000_s22 = smov 5  }
   0x4   :  { %s5073_s17 = sld [smem:[%s5682_s0 + %s4998_s14]]   ;;  %s5001_s26 = smov 6  }
   0x5   :  { %s5078_s21 = sld [smem:[%s5682_s0 + %s4999_s18]]   ;;  %s5002_s30 = smov 7  }
   0x6   :  { %s5083_s25 = sld [smem:[%s5682_s0 + %s5000_s22]]   ;;  %s5003_s4 = smov 8  }
   0x7   :  { %5699 = sst [smem:[#allocation5_spill]] %s5058_s5  ;;  %s5004_s10 = smov 9  }
   0x8   :  { %5700 = sst [smem:[#allocation6_spill]] %s5063_s9  ;;  %s5005_s15 = smov 10  }
   0x9   :  { %s5088_s29 = sld [smem:[%s5682_s0 + %s5001_s26]]   ;;  %s5006_s20 = smov 11  }
   0xa   :  { %5701 = sst [smem:[#allocation7_spill]] %s5073_s17  ;;  %s5007_s26 = smov 12  }
   0xb   :  { %s5093_s3 = sld [smem:[%s5682_s0 + %s5002_s30]]   ;;  %s5008_s1 = smov 13  }
   0xc   :  { %s5098_s8 = sld [smem:[%s5682_s0 + %s5003_s4]]   ;;  %s5009_s7 = smov 14  }
   0xd   :  { %s5103_s14 = sld [smem:[%s5682_s0 + %s5004_s10]]   ;;  %s5011_s22 = smov 16  }
   0xe   :  { %s5108_s19 = sld [smem:[%s5682_s0 + %s5005_s15]]   ;;  %s5010_s15 = smov 15  }
   0xf   :  { %s5113_s24 = sld [smem:[%s5682_s0 + %s5006_s20]]   ;;  %s5012_s28 = smov 17  }
  0x10   :  { %s5118_s30 = sld [smem:[%s5682_s0 + %s5007_s26]]  }
  0x11   :  { %5702 = sst [smem:[#allocation8_spill]] %s5093_s3 }
  0x12   :  { %5703 = sst [smem:[#allocation9_spill]] %s5098_s8 }
  0x13   :  { %s5123_s6 = sld [smem:[%s5682_s0 + %s5008_s1]]  }
  0x14   :  { %5704 = sst [smem:[#allocation10_spill]] %s5108_s19 }
  0x15   :  { %5705 = sst [smem:[#allocation11_spill]] %s5113_s24 }
  0x16   :  { %5706 = sst [smem:[#allocation12_spill]] %s5118_s30 }
  0x17   :  { %s5128_s12 = sld [smem:[%s5682_s0 + %s5009_s7]]   ;;  %s5013_s7 = smov 18  }
  0x18   :  { %s5133_s20 = sld [smem:[%s5682_s0 + %s5010_s15]]   ;;  %s5014_s15 = smov 19  }
  0x19   :  { %5707 = sst [smem:[#allocation13_spill]] %s5123_s6 }
  0x1a   :  { %s5138_s27 = sld [smem:[%s5682_s0 + %s5011_s22]]   ;;  %s5015_s22 = smov 20  }
  0x1b   :  { %s5143_s4 = sld [smem:[%s5682_s0 + %s5012_s28]]   ;;  %s5016_s28 = smov 21  }
  0x1c   :  { %s5153_s30 = sld [smem:[%s5682_s0 + %s5014_s15]]   ;;  %s5018_s15 = smov 23  }
  0x1d   :  { %5708 = sst [smem:[#allocation14_spill]] %s5128_s12 }
  0x1e   :  { %5709 = sst [smem:[#allocation15_spill]] %s5133_s20 }
  0x1f   :  { %s5148_s12 = sld [smem:[%s5682_s0 + %s5013_s7]]   ;;  %s5017_s7 = smov 22  }
  0x20   :  { %5710 = sst [smem:[#allocation16_spill]] %s5138_s27 }
  0x21   :  { %5711 = sst [smem:[#allocation17_spill]] %s5143_s4 }
  0x22   :  { %5713 = sst [smem:[#allocation19_spill]] %s5153_s30 }
  0x23   :  { %s5158_s27 = sld [smem:[%s5682_s0 + %s5015_s22]]   ;;  %s5019_s22 = smov 24  }
  0x24   :  { %s5163_s4 = sld [smem:[%s5682_s0 + %s5016_s28]]   ;;  %s5020_s28 = smov 25  }
  0x25   :  { %5712 = sst [smem:[#allocation18_spill]] %s5148_s12 }
  0x26   :  { %s5168_s12 = sld [smem:[%s5682_s0 + %s5017_s7]]   ;;  %s5021_s7 = smov 26  }
  0x27   :  { %s5173_s30 = sld [smem:[%s5682_s0 + %s5018_s15]]   ;;  %s5022_s15 = smov 27  }
  0x28   :  { %s5183_s20 = sld [smem:[%s5682_s0 + %s5020_s28]]   ;;  %s5024_s28 = smov 29  }
  0x29   :  { %5714 = sst [smem:[#allocation20_spill]] %s5158_s27 }
  0x2a   :  { %5715 = sst [smem:[#allocation21_spill]] %s5163_s4 }
  0x2b   :  { %s5178_s27 = sld [smem:[%s5682_s0 + %s5019_s22]]   ;;  %s5023_s22 = smov 28  }
  0x2c   :  { %5716 = sst [smem:[#allocation22_spill]] %s5168_s12 }
  0x2d   :  { %s5188_s6 = sld [smem:[%s5682_s0 + %s5021_s7]]   ;;  %s5025_s7 = smov 30  }
  0x2e   :  { %5717 = sst [smem:[#allocation23_spill]] %s5183_s20 }
  0x2f   :  { %s5193_s19 = sld [smem:[%s5682_s0 + %s5022_s15]]   ;;  %s5026_s15 = smov 31  }
  0x30   :  { %s5198_s24 = sld [smem:[%s5682_s0 + %s5023_s22]]   ;;  %s5027_s22 = smov 32  }
  0x31   :  { %s5203_s20 = sld [smem:[%s5682_s0 + %s5024_s28]]  }
  0x33   :  { %5718 = sst [smem:[#allocation24_spill]] %s5188_s6 }
  0x34   :  { %s5208_s6 = sld [smem:[%s5682_s0 + %s5025_s7]]  }
  0x35   :  { %5719 = sst [smem:[#allocation25_spill]] %s5193_s19 }
  0x36   :  { %5720 = sst [smem:[#allocation26_spill]] %s5198_s24 }
  0x37   :  { %s5213_s19 = sld [smem:[%s5682_s0 + %s5026_s15]]  }
  0x38   :  { %s5218_s24 = sld [smem:[%s5682_s0 + %s5027_s22]]  }
  0x3a   :  { %5721 = sst [smem:[#allocation27_spill]] %s5208_s6 }
  0x3b   :  { %71 = vsyncpa [#allocation3], 0 }
  0x3c   :  { %73 = vsyncpa [#allocation3 + $0x1], 0  ;;  %s5220_s28 = smov 0   ;;  %s5222_s1 = smov 0  }
  0x3d   :  { %s5224_s2 = smov 0   ;;  %s5226_s7 = smov 0  }
  0x3e LB: > { %s5722_s12 = sld [smem:[#allocation22_spill]]  ;;  %s5723_s8 = sld [smem:[#allocation9_spill]]  ;;  %s4982_s28 = sphi %s5220_s28, %s5747_s28   ;;  %s4994_s7 = sphi %s5226_s7, %s5750_s7   ;;  %s4990_s2 = sphi %s5224_s2, %s5749_s2   ;;  %s4986_s1 = sphi %s5222_s1, %s5748_s1  }
  0x3f   : > { %s5724_s4 = sld [smem:[#allocation21_spill]]  ;;  %s5725_s3 = sld [smem:[#allocation8_spill]] }
  0x40   : > { %s5726_s17 = sld [smem:[#allocation7_spill]]  ;;  %s5241_s0 = sadd.s32 4294967295, %s4994_s7  }
  0x41   : > { %s4231_s10 = sadd.s32 4294967294, %s4994_s7   ;;  %s5245_s11 = sadd.s32 1, %s4994_s7  }
  0x42   : > { %s752_s15 = sadd.s32 1, %s4990_s2  ;;  %s749_s16 = ssub.s32 %s4994_s7, %s5245_s11 }
  0x43   : > { %p762_p0 = scmp.ne.s32.totalorder %s4990_s2, %s4986_s1  ;;  %p750_p1 = scmp.eq.s32.totalorder %s749_s16, 0 }
  0x44   : > { %p763_p2 = scmp.eq.s32.totalorder %s5241_s0, 1  ;;  %p768_p3 = scmp.ne.s32.totalorder %s4986_s1, %s4982_s28 }
  0x45   : > { %p769_p4 = scmp.eq.s32.totalorder %s4231_s10, 1  ;;  %p4234_p7 = scmp.ge.s32.totalorder %s4994_s7, 1 }
  0x46   : > { %s5256_s18 = scalar_select %p750_p1, %s4990_s2, %s752_s15  }
  0x47   : > { %p5258_p5 = por %p763_p2, %p762_p0  ;;  %p5262_p6 = por %p769_p4, %p768_p3 }
  0x48   : > { %p917_p8 = scmp.lt.s32.totalorder %s4994_s7, 3 }
  0x4a   : > { %p918_p9 = pnand %p4234_p7, %p917_p8 }
  0x4b   : > { %v1114_v0 = vld [vmem:[%s5083_s25] sm:$0xff] (!%p918_p9)  ;;  %v1115_v1 = vld [vmem:[%s5083_s25 + $0x8] sm:$0xff] (!%p918_p9)  ;;  %v1116_v2 = vld [vmem:[%s5083_s25 + $0x10] sm:$0xff] (!%p918_p9)  ;;  %v5028_v3 = vmov (!%p918_p9), 0.0|0.0   ;;  %vm1040_vm0 = vcmask (!%p918_p9), 1041408   ;;  %vm5029_vm1 = vmmov (!%p918_p9), 0   ;;  %v1194_v31 = vlaneseq (!%p918_p9) }
  0x4c   : > { %921 = sbr.rel (%p918_p9) target bundleno = 3079 (0xc07), region = 144  ;;  %4708 = vmatprep.subr.bf16.mxu1 (!%p918_p9), %v5028_v3  ;;  %v4709_v4 = vpack.c.bf16 (!%p918_p9), %v1115_v1, %v1114_v0  ;;  %v1117_v5 = vld [vmem:[%s5083_s25 + $0x18] sm:$0xff] (!%p918_p9)  ;;  %4704 = vmatprep.subr.bf16.mxu0 (!%p918_p9), %v5028_v3  ;;  %v1027_v6 = vld [vmem:[%s5726_s17] sm:$0xff] (!%p918_p9)  ;;  %v1028_v7 = vld [vmem:[%s5726_s17 + $0x8] sm:$0x3] (!%p918_p9)  ;;  %v5030_v8 = vmov (!%p918_p9), 0.0  }
  0x4d   : > { %4444 = vmatprep.mubr.msk.f32.mxu1 (!%p918_p9), %vm5029_vm1, %v5030_v8  ;;  %v4705_v9 = vpack.c.bf16 (!%p918_p9), %v1028_v7, %v1027_v6  ;;  %vm5031_vm2 = vmmov (!%p918_p9), 1   ;;  %s5729_s5 = sld [smem:[#allocation5_spill]] (!%p918_p9)  ;;  %s5730_s9 = sld [smem:[#allocation6_spill]] (!%p918_p9)  ;;  %4433 = vmatprep.mubr.msk.f32.mxu0 (!%p918_p9), %vm5029_vm1, %v5030_v8  ;;  %v4712_v10 = vpack.c.bf16 (!%p918_p9), %v1117_v5, %v1116_v2  ;;  %vm1036_vm4 = vcmask (!%p918_p9), 80896   ;;  %v1199_v14 = vld [vmem:[%s5724_s4] sm:$0xff] (!%p918_p9)  ;;  %v1300_v16 = vld [vmem:[%s5725_s3 + $0x8] sm:$0xff] (!%p918_p9) }
  0x4e   : > { %vm4706_vm3 = vmpackc.low (!%p918_p9), %vm1040_vm0, %vm5031_vm2  ;;  %p1009_p10 = scmp.lt.s32.totalorder (!%p918_p9), %s5241_s0, 1  ;;  %4710 = vmatpush3.bf16.msra.mxu1 (!%p918_p9), %v4709_v4  ;;  %vm1220_vm5 = vcmask (!%p918_p9), 1044480   ;;  %vm1119_vm6 = vcmask (!%p918_p9), 261120   ;;  %vm1213_vm7 = vcmask (!%p918_p9), 39936   ;;  %v1299_v15 = vld [vmem:[%s5725_s3] sm:$0xff] (!%p918_p9)  ;;  %v1200_v18 = vld [vmem:[%s5724_s4 + $0x8] sm:$0xff] (!%p918_p9) }
  0x4f   : > { %4711 = vmatprep.subr.bf16.mxu1 (!%p918_p9), %v5028_v3  ;;  %4707 = vmatpush3.bf16.msk.msra.mxu0 (!%p918_p9), %vm4706_vm3, %v4705_v9  ;;  %v1303_v17 = vld [vmem:[%s5725_s3 + $0x20] sm:$0xff] (!%p918_p9)  ;;  %v4715_v19 = vpack.c.bf16 (!%p918_p9), %v1300_v16, %v1299_v15  ;;  %v1304_v20 = vld [vmem:[%s5725_s3 + $0x28] sm:$0xff] (!%p918_p9)  ;;  %v1301_v22 = vld [vmem:[%s5725_s3 + $0x10] sm:$0xff] (!%p918_p9)  ;;  %v5032_v29 = vmov (!%p918_p9), 0   ;;  %v5314_v32 = vshrl.u32 (!%p918_p9), %v1194_v31, 7  ;;  %vm2281_vm8 = vcmask (!%p918_p9), 130048  }
  0x50   : > { %v4721_v21 = vpack.c.bf16 (!%p918_p9), %v1304_v20, %v1303_v17  ;;  %v1302_v23 = vld [vmem:[%s5725_s3 + $0x18] sm:$0xff] (!%p918_p9)  ;;  %v1305_v24 = vld [vmem:[%s5725_s3 + $0x30] sm:$0xff] (!%p918_p9)  ;;  %v1201_v28 = vld [vmem:[%s5722_s12] sm:$0xff] (!%p918_p9)  ;;  %4908 = vset.pattern.permute.xlu0 (!%p918_p9), %v5032_v29  ;;  %4909 = vset.pattern.permute.xlu1 (!%p918_p9), %v5032_v29  ;;  %vm2355_vm9 = vcmask (!%p918_p9), 64512   ;;  %s5040_s4 = smov (!%p918_p9), 40   ;;  %vm2762_vm10 = vcmask (!%p918_p9), 195584  }
  0x51   : > { %v4718_v25 = vpack.c.bf16 (!%p918_p9), %v1302_v23, %v1301_v22  ;;  %v1306_v26 = vld [vmem:[%s5725_s3 + $0x38] sm:$0xff] (!%p918_p9)  ;;  %1205 = vperm.xlu0 (!%p918_p9), %4908, %v1201_v28   ;;  %v1202_v30 = vld [vmem:[%s5722_s12 + $0x8] sm:$0xff] (!%p918_p9)  ;;  %v1118_v33 = vld [vmem:[%s5088_s29] sm:$0x1] (!%p918_p9)  ;;  %v1196_v39 = vsub.s32 (!%p918_p9), 0, %v5314_v32  ;;  %vm2765_vm11 = vcmask (!%p918_p9), 326656  }
  0x52   : > { %4713 = vmatpush3.bf16.msra.mxu1 (!%p918_p9), %v4712_v10  ;;  %v4724_v27 = vpack.c.bf16 (!%p918_p9), %v1306_v26, %v1305_v24  ;;  %v4239_v36 = vld [vmem:[%s5078_s21] ss:$0 sm:$0xff] (!%p918_p9)  ;;  %v1308_v44 = vld [vmem:[%s5725_s3 + $0x48] sm:$0xff] (!%p918_p9)  ;;  %v1309_v50 = vld [vmem:[%s5725_s3 + $0x50] sm:$0xff] (!%p918_p9)  ;;  %vm2767_vm12 = vcmask (!%p918_p9), 392192   ;;  %vm2769_vm13 = vcmask (!%p918_p9), 457728  }
  0x53   : > { %s1010_s26 = scalar_select %p1009_p10, %s5241_s0, 1  ;;  %4720 = vmatprep.subr.bf16.mxu1 %v5028_v3  ;;  %v1307_v41 = vld [vmem:[%s5725_s3 + $0x40] sm:$0xff]  ;;  %v1312_v46 = vld [vmem:[%s5725_s3 + $0x68] sm:$0xff]  ;;  %v1310_v52 = vld [vmem:[%s5725_s3 + $0x58] sm:$0xff]  ;;  %vm3770_vm14 = vcmask 1043456   ;;  %vm3763_vm15 = vcmask 31744  }
  0x54   : > { %v1311_v45 = vld [vmem:[%s5725_s3 + $0x60] sm:$0xff]  ;;  %v4727_v48 = vpack.c.bf16 %v1308_v44, %v1307_v41  ;;  %v1313_v53 = vld [vmem:[%s5725_s3 + $0x70] sm:$0xff]  ;;  %v1314_v54 = vld [vmem:[%s5725_s3 + $0x78] sm:$0xff]  ;;  %v4730_v55 = vpack.c.bf16 %v1310_v52, %v1309_v50  ;;  %vm3645_vm0 = vcmask 523264   ;;  %s5742_s6 = sld [smem:[#allocation27_spill]] }
  0x55   : > { %s1019_s10 = scalar_lea.vmem %s5068_s13, %s1010_s26  ;;  %s5284_s15 = sshll.u32 %s1010_s26, 3  ;;  %1210 = vperm.xlu0 %4908, %v1202_v30   ;;  %v4733_v49 = vpack.c.bf16 %v1312_v46, %v1311_v45  ;;  %v4736_v56 = vpack.c.bf16 %v1314_v54, %v1313_v53  ;;  %v1315_v57 = vld [vmem:[%s5725_s3 + $0x80] sm:$0xff]  ;;  %v1316_v58 = vld [vmem:[%s5725_s3 + $0x88] sm:$0xff]  ;;  %v1317_v63 = vld [vmem:[%s5725_s3 + $0x90] sm:$0xff] }
  0x56   : > { %v1026_v11 = vld [vmem:[%s1019_s10] sm:$0x1]  ;;  %s1012_s16 = scalar_lea.vmem %s5729_s5, %s5284_s15  ;;  %s1016_s17 = scalar_lea.vmem %s5730_s9, %s5284_s15  ;;  %v1320_v60 = vld [vmem:[%s5725_s3 + $0xa8] sm:$0xff]  ;;  %v4739_v61 = vpack.c.bf16 %v1316_v58, %v1315_v57  ;;  %v1318_v0 = vld [vmem:[%s5725_s3 + $0x98] sm:$0xff] }
  0x57   : > { %v1024_v12 = vld [vmem:[%s1012_s16] sm:$0xff]  ;;  %4445 = vmatmul.mubr.msk.f32.vlgmr.msra.gmra.mrb[0].mxu1 %vm1119_vm6, %v1026_v11  ;;  %v1321_v1 = vld [vmem:[%s5725_s3 + $0xb0] sm:$0xff]  ;;  %v1322_v2 = vld [vmem:[%s5725_s3 + $0xb8] sm:$0xff]  ;;  %v4742_v4 = vpack.c.bf16 %v1318_v0, %v1317_v63  ;;  %s5036_s26 = smov 8   ;;  %s5037_s10 = smov 32  }
  0x58   : > { %v1025_v13 = vld [vmem:[%s1016_s17] sm:$0x1f]  ;;  %4434 = vmatmul.mubr.msk.f32.vlgmr.msra.gmra.mrb[0].mxu0 %vm1036_vm4, %v1024_v12  ;;  %4471 = vmatprep.mubr.msk.f32.mxu1 %vm5029_vm1, %v5030_v8  ;;  %v4748_v5 = vpack.c.bf16 %v1322_v2, %v1321_v1  ;;  %v1324_v7 = vld [vmem:[%s5725_s3 + $0xc8] sm:$0xff]  ;;  %v1329_v15 = vld [vmem:[%s5725_s3 + $0xf0] sm:$0xff]  ;;  %s5035_s17 = smov 16   ;;  %s5038_s16 = smov 24  }
  0x59   : > { %4447 = vmatprep.subr.msk.mxu0 %vm1220_vm5, %v1025_v13  ;;  %4449 = vmatprep.mubr.msk.f32.mxu0 %vm1213_vm7, %v1199_v14  ;;  %v1319_v59 = vld [vmem:[%s5725_s3 + $0xa0] sm:$0xff]  ;;  %v1328_v10 = vld [vmem:[%s5725_s3 + $0xe8] sm:$0xff]  ;;  %v1326_v14 = vld [vmem:[%s5725_s3 + $0xd8] sm:$0xff]  ;;  %s5048_s5 = smov 72  }
  0x5a   : > { %4448 = vmatpush3.msk.msra.mxu0 %vm1220_vm5, %v1025_v13  ;;  %4722 = vmatpush3.bf16.msra.mxu1 %v4721_v21  ;;  %v4745_v62 = vpack.c.bf16 %v1320_v60, %v1319_v59  ;;  %v1323_v6 = vld [vmem:[%s5725_s3 + $0xc0] sm:$0xff]  ;;  %v1325_v13 = vld [vmem:[%s5725_s3 + $0xd0] sm:$0xff]  ;;  %v1330_v16 = vld [vmem:[%s5725_s3 + $0xf8] sm:$0xff] }
  0x5b   : > { %4714 = vmatprep.subr.bf16.mxu0 %v5028_v3  ;;  %4723 = vmatprep.subr.bf16.mxu1 %v5028_v3  ;;  %v1327_v9 = vld [vmem:[%s5725_s3 + $0xe0] sm:$0xff]  ;;  %v4751_v11 = vpack.c.bf16 %v1324_v7, %v1323_v6  ;;  %v4754_v17 = vpack.c.bf16 %v1326_v14, %v1325_v13  ;;  %v1332_v20 = vld [vmem:[%s5725_s3 + $0x108] sm:$0xff]  ;;  %v1334_v26 = vld [vmem:[%s5725_s3 + $0x118] sm:$0xff] }
  0x5c   : > { %4450 = vmatmul.mubr.msk.f32.vlgmr.msra.gmra.mrb[2].mxu0 %vm1213_vm7, %v1200_v18  ;;  %v4757_v12 = vpack.c.bf16 %v1328_v10, %v1327_v9  ;;  %v4760_v18 = vpack.c.bf16 %v1330_v16, %v1329_v15  ;;  %v1335_v21 = vld [vmem:[%s5725_s3 + $0x120] sm:$0xff]  ;;  %v1336_v22 = vld [vmem:[%s5725_s3 + $0x128] sm:$0xff]  ;;  %v1338_v28 = vld [vmem:[%s5725_s3 + $0x138] sm:$0xff] }
  0x5d   : > { %4716 = vmatpush3.bf16.msra.mxu0 %v4715_v19  ;;  %4460 = vmatprep.mubr.msk.f32.mxu0 %vm5029_vm1, %v5030_v8  ;;  %v1331_v19 = vld [vmem:[%s5725_s3 + $0x100] sm:$0xff]  ;;  %v4769_v24 = vpack.c.bf16 %v1336_v22, %v1335_v21  ;;  %v1346_v41 = vld [vmem:[%s5725_s3 + $0x178] sm:$0xff] }
  0x5e   : > { %4717 = vmatprep.subr.bf16.mxu0 %v5028_v3  ;;  %4725 = vmatpush3.bf16.msra.mxu1 %v4724_v27  ;;  %v4763_v23 = vpack.c.bf16 %v1332_v20, %v1331_v19  ;;  %v1337_v27 = vld [vmem:[%s5725_s3 + $0x130] sm:$0xff]  ;;  %v1339_v31 = vld [vmem:[%s5725_s3 + $0x140] sm:$0xff] }
  0x5f   : > { %4732 = vmatprep.subr.bf16.mxu1 %v5028_v3  ;;  %v4772_v30 = vpack.c.bf16 %v1338_v28, %v1337_v27  ;;  %v2274_v52 = vld [vmem:[%s5173_s30] sm:$0xff] }
  0x60   : > { %v2275_v53 = vld [vmem:[%s5178_s27] sm:$0xff] }
  0x61   : > { %4719 = vmatpush3.bf16.msra.mxu0 %v4718_v25  ;;  %v1333_v25 = vld [vmem:[%s5725_s3 + $0x110] sm:$0xff]  ;;  %2278 = vperm.xlu1 %4909, %v2275_v53   ;;  %v4251_v63 = vld [vmem:[%s5723_s8 + $0x5] ss:$0 sm:$0xff]  ;;  %v4246_v2 = vld [vmem:[%s5723_s8] ss:$0 sm:$0xff] }
  0x62   : > { %4726 = vmatprep.subr.bf16.mxu0 %v5028_v3  ;;  %v4766_v29 = vpack.c.bf16 %v1334_v26, %v1333_v25  ;;  %v4253_v13 = vld [vmem:[%s5723_s8 + $0x7] ss:$0 sm:$0xff]  ;;  %v4248_v16 = vld [vmem:[%s5723_s8 + $0x2] ss:$0 sm:$0xff]  ;;  %v4255_v25 = vld [vmem:[%s5723_s8 + $0x9] ss:$0 sm:$0xff] }
  0xd0   : > { %v1206_v44 = vpop.permute.xlu0 %1205 }
  0xd4   : > { %v1211_v45 = vpop.permute.xlu0 %1210 }
 0x12a   : > { %v1189_v35 = vpop.f32.mrb[0].mxu1 }
 0x12b   : > { %v1110_v34 = vpop.f32.mrb[0].mxu0  ;;  %v1190_v38 = vadd.f32 %v1189_v35, %v1118_v33  ;;  %v4446_v40 = vpop.f32.mrb[1].mxu1  ;;  %v1340_v33 = vld [vmem:[%s5725_s3 + $0x148] sm:$0xff] }
 0x12c   : > { %v4435_v37 = vpop.f32.mrb[1].mxu0  ;;  %v1111_v43 = vadd.f32 %v4239_v36, %v1110_v34  ;;  %v1343_v34 = vld [vmem:[%s5725_s3 + $0x160] sm:$0xff]  ;;  %v1344_v35 = vld [vmem:[%s5725_s3 + $0x168] sm:$0xff]  ;;  %v4775_v36 = vpack.c.bf16 %v1340_v33, %v1339_v31  ;;  %v1345_v40 = vld [vmem:[%s5725_s3 + $0x170] sm:$0xff] }
 0x12d   : > { %v1193_v42 = vmax.f32 %v1190_v38, 0.0  ;;  %v4781_v37 = vpack.c.bf16 %v1344_v35, %v1343_v34  ;;  %v1341_v38 = vld [vmem:[%s5725_s3 + $0x150] sm:$0xff] }
 0x12f   : > { %v1197_v47 = vrot.slane %v1193_v42, %v1196_v39  ;;  %v1342_v39 = vld [vmem:[%s5725_s3 + $0x158] sm:$0xff]  ;;  %v4451_v46 = vpop.f32.mrb[2].mxu0  ;;  %s5039_s3 = smov 48  }
 0x130   : > { %v4778_v42 = vpack.c.bf16 %v1342_v39, %v1341_v38 }
 0x131   : > { %v5324_v51 = vadd.f32 %v1197_v47, %v1111_v43  ;;  %v4784_v43 = vpack.c.bf16 %v1346_v41, %v1345_v40  ;;  %v5429_v47 = vadd.f32 %v4451_v46, %v1211_v45  ;;  %v5033_v41 = vmov 1983009808  }
 0x132   : > { %v5034_v45 = vmov 1934713408  }
 0x133   : > { %4461 = vmatmul.mubr.msk.f32.vlgmr.msra.gmra.mrb[4].mxu0 %vm1119_vm6, %v5324_v51  ;;  %4472 = vmatmul.mubr.msk.f32.vlgmr.msra.gmra.mrb[2].mxu1 %vm1119_vm6, %v5324_v51  ;;  %v2699_v46 = vunpack.c.l.s4 %v5034_v45 }
 0x134   : > { %4728 = vmatpush3.bf16.msra.mxu0 %v4727_v48  ;;  %4734 = vmatpush3.bf16.msra.mxu1 %v4733_v49  ;;  %v1290_v48 = vpop.f32.mrb[3].mxu0 }
 0x135   : > { %4729 = vmatprep.subr.bf16.mxu0 %v5028_v3  ;;  %4735 = vmatprep.subr.bf16.mxu1 %v5028_v3  ;;  %v5431_v49 = vadd.f32 %v1290_v48, %v1206_v44 }
 0x136   : > { %4482 = vmatprep.mubr.msk.f32.mxu0 %vm5029_vm1, %v5030_v8  ;;  %4493 = vmatprep.mubr.msk.f32.mxu1 %vm5029_vm1, %v5030_v8 }
 0x137   : > { %v4787_v50 = vpack.c.bf16 %v5429_v47, %v5431_v49 }
 0x138   : > { %4731 = vmatpush3.bf16.msra.mxu0 %v4730_v55  ;;  %4737 = vmatpush3.bf16.msra.mxu1 %v4736_v56 }
 0x139   : > { %4738 = vmatprep.subr.bf16.mxu0 %v5028_v3  ;;  %4744 = vmatprep.subr.bf16.mxu1 %v5028_v3 }
 0x13b   : > { %4483 = vmatmul.mubr.msk.f32.vlgmr.msra.gmra.mrb[6].mxu0 %vm1119_vm6, %v5324_v51  ;;  %4494 = vmatmul.mubr.msk.f32.vlgmr.msra.gmra.mrb[4].mxu1 %vm1119_vm6, %v5324_v51 }
 0x13c   : > { %4740 = vmatpush3.bf16.msra.mxu0 %v4739_v61  ;;  %4746 = vmatpush3.bf16.msra.mxu1 %v4745_v62  ;;  %v4250_v62 = vld [vmem:[%s5723_s8 + $0x4] ss:$0 sm:$0xff] }
 0x13d   : > { %4741 = vmatprep.subr.bf16.mxu0 %v5028_v3  ;;  %4747 = vmatprep.subr.bf16.mxu1 %v5028_v3 }
 0x13e   : > { %4504 = vmatprep.mubr.msk.f32.mxu0 %vm5029_vm1, %v5030_v8  ;;  %4515 = vmatprep.mubr.msk.f32.mxu1 %vm5029_vm1, %v5030_v8 }
 0x140   : > { %4743 = vmatpush3.bf16.msra.mxu0 %v4742_v4  ;;  %4749 = vmatpush3.bf16.msra.mxu1 %v4748_v5  ;;  %v4247_v4 = vld [vmem:[%s5723_s8 + $0x1] ss:$0 sm:$0xff] }
 0x141   : > { %4750 = vmatprep.subr.bf16.mxu0 %v5028_v3  ;;  %4756 = vmatprep.subr.bf16.mxu1 %v5028_v3 }
 0x143   : > { %4505 = vmatmul.mubr.msk.f32.vlgmr.msra.gmra.mrb[8].mxu0 %vm1119_vm6, %v5324_v51  ;;  %4516 = vmatmul.mubr.msk.f32.vlgmr.msra.gmra.mrb[6].mxu1 %vm1119_vm6, %v5324_v51 }
 0x144   : > { %4752 = vmatpush3.bf16.msra.mxu0 %v4751_v11  ;;  %4758 = vmatpush3.bf16.msra.mxu1 %v4757_v12  ;;  %v4252_v12 = vld [vmem:[%s5723_s8 + $0x6] ss:$0 sm:$0xff] }
 0x145   : > { %4753 = vmatprep.subr.bf16.mxu0 %v5028_v3  ;;  %4759 = vmatprep.subr.bf16.mxu1 %v5028_v3 }
 0x146   : > { %4526 = vmatprep.mubr.msk.f32.mxu0 %vm5029_vm1, %v5030_v8  ;;  %4537 = vmatprep.mubr.msk.f32.mxu1 %vm5029_vm1, %v5030_v8 }
 0x148   : > { %4755 = vmatpush3.bf16.msra.mxu0 %v4754_v17  ;;  %4761 = vmatpush3.bf16.msra.mxu1 %v4760_v18  ;;  %v4249_v17 = vld [vmem:[%s5723_s8 + $0x3] ss:$0 sm:$0xff] }
 0x149   : > { %4762 = vmatprep.subr.bf16.mxu0 %v5028_v3  ;;  %4768 = vmatprep.subr.bf16.mxu1 %v5028_v3 }
 0x14b   : > { %4527 = vmatmul.mubr.msk.f32.vlgmr.msra.gmra.mrb[10].mxu0 %vm1119_vm6, %v5324_v51  ;;  %4538 = vmatmul.mubr.msk.f32.vlgmr.msra.gmra.mrb[8].mxu1 %vm1119_vm6, %v5324_v51 }
 0x14c   : > { %4764 = vmatpush3.bf16.msra.mxu0 %v4763_v23  ;;  %4770 = vmatpush3.bf16.msra.mxu1 %v4769_v24  ;;  %v4254_v24 = vld [vmem:[%s5723_s8 + $0x8] ss:$0 sm:$0xff] }
 0x14d   : > { %4765 = vmatprep.subr.bf16.mxu0 %v5028_v3  ;;  %4771 = vmatprep.subr.bf16.mxu1 %v5028_v3 }
 0x14e   : > { %4548 = vmatprep.mubr.msk.f32.mxu0 %vm5029_vm1, %v5030_v8  ;;  %4559 = vmatprep.mubr.msk.f32.mxu1 %vm5029_vm1, %v5030_v8 }
 0x150   : > { %4767 = vmatpush3.bf16.msra.mxu0 %v4766_v29  ;;  %4773 = vmatpush3.bf16.msra.mxu1 %v4772_v30 }
 0x151   : > { %4774 = vmatprep.subr.bf16.mxu0 %v5028_v3  ;;  %4780 = vmatprep.subr.bf16.mxu1 %v5028_v3 }
 0x153   : > { %4549 = vmatmul.mubr.msk.f32.vlgmr.msra.gmra.mrb[12].mxu0 %vm1119_vm6, %v5324_v51  ;;  %4560 = vmatmul.mubr.msk.f32.vlgmr.msra.gmra.mrb[10].mxu1 %vm1119_vm6, %v5324_v51 }
 0x154   : > { %4776 = vmatpush3.bf16.msra.mxu0 %v4775_v36  ;;  %4782 = vmatpush3.bf16.msra.mxu1 %v4781_v37 }
 0x155   : > { %4777 = vmatprep.subr.bf16.mxu0 %v5028_v3  ;;  %4783 = vmatprep.subr.bf16.mxu1 %v5028_v3 }
 0x156   : > { %4570 = vmatprep.mubr.msk.f32.mxu0 %vm5029_vm1, %v5030_v8  ;;  %4581 = vmatprep.mubr.msk.f32.mxu1 %vm5029_vm1, %v5030_v8 }
 0x158   : > { %4779 = vmatpush3.bf16.msra.mxu0 %v4778_v42  ;;  %4785 = vmatpush3.bf16.msra.mxu1 %v4784_v43  ;;  %v2667_v42 = vunpack.c.l.s4 %v5033_v41 }
 0x159   : > { %4786 = vmatprep.subr.bf16.mxu0 %v5028_v3  ;;  %4591 = vmatprep.subr.mxu1 %v5030_v8 }
 0x15a   : > { %v2668_v48 = vunpack.c.0.s8 %v2667_v42 }
 0x15b   : > { %4571 = vmatmul.mubr.msk.f32.vlgmr.msra.gmra.mrb[14].mxu0 %vm1119_vm6, %v5324_v51  ;;  %4582 = vmatmul.mubr.msk.f32.vlgmr.msra.gmra.mrb[12].mxu1 %vm1119_vm6, %v5324_v51 }
 0x15c   : > { %4588 = vmatprep.mubr.msk.f32.mxu0 %vm5029_vm1, %v5030_v8  ;;  %4593 = vmatprep.mubr.msk.f32.mxu1 %vm5029_vm1, %v5030_v8 }
 0x15d   : > { %4788 = vmatpush3.bf16.msra.mxu0 %v4787_v50  ;;  %v2700_v50 = vunpack.c.0.s8 %v2699_v46 }
 0x15e   : > { %4596 = vmatprep.subr.mxu0 %v5030_v8 }
 0x160   : > { %4589 = vmatmul.mubr.msk.f32.vlgmr.msra.gmra.mrb[16].mxu0 %vm2281_vm8, %v2274_v52 }
 0x161   : > { %4598 = vmatprep.mubr.msk.f32.mxu0 %vm5029_vm1, %v5030_v8 }
 0x206   : > { %v1500_v54 = vpop.f32.mrb[4].mxu0  ;;  %v1570_v55 = vpop.f32.mrb[2].mxu1 }
 0x207   : > { %v4462_v56 = vpop.f32.mrb[5].mxu0  ;;  %v4473_v57 = vpop.f32.mrb[3].mxu1  ;;  %v1501_v10 = vadd.f32 %v4246_v2, %v1500_v54  ;;  %v1571_v11 = vadd.f32 %v4247_v4, %v1570_v55 }
 0x208   : > { %v5480_v56 = vsub.s32 %v2668_v48, %v5314_v32 }
 0x20e   : > { %v1640_v58 = vpop.f32.mrb[6].mxu0  ;;  %v1710_v59 = vpop.f32.mrb[4].mxu1 }
 0x20f   : > { %v4484_v60 = vpop.f32.mrb[7].mxu0  ;;  %v4495_v61 = vpop.f32.mrb[5].mxu1  ;;  %v1641_v22 = vadd.f32 %v4248_v16, %v1640_v58  ;;  %v1711_v23 = vadd.f32 %v4249_v17, %v1710_v59 }
 0x216   : > { %v1780_v0 = vpop.f32.mrb[8].mxu0  ;;  %v1850_v1 = vpop.f32.mrb[6].mxu1 }
 0x217   : > { %v1781_v5 = vadd.f32 %v4250_v62, %v1780_v0  ;;  %v1851_v6 = vadd.f32 %v4251_v63, %v1850_v1  ;;  %v4506_v7 = vpop.f32.mrb[9].mxu0  ;;  %v4517_v9 = vpop.f32.mrb[7].mxu1  ;;  %v5483_v1 = vsub.s32 %v2700_v50, %v5314_v32 }
 0x219   : > { %4592 = vmatpush3.xpose.msk.msra.mxu1 %vm2355_vm9, %v1781_v5  ;;  %4597 = vmatpush3.xpose.msk.msra.mxu0 %vm2355_vm9, %v1851_v6 }
 0x21a   : > { %4601 = vmatprep.subr.mxu1 %v5030_v8  ;;  %4606 = vmatprep.subr.mxu0 %v5030_v8 }
 0x21c   : > { %4594 = vmatmul.mubr.msk.f32.vlgmr.msra.gmra.mrb[14].mxu1 %vm2355_vm9, %v1501_v10  ;;  %4599 = vmatmul.mubr.msk.f32.vlgmr.msra.gmra.mrb[18].mxu0 %vm2355_vm9, %v1571_v11 }
 0x21d   : > { %4603 = vmatprep.mubr.msk.f32.mxu1 %vm5029_vm1, %v5030_v8  ;;  %4608 = vmatprep.mubr.msk.f32.mxu0 %vm5029_vm1, %v5030_v8 }
 0x21e   : > { %v1920_v14 = vpop.f32.mrb[10].mxu0  ;;  %v1990_v15 = vpop.f32.mrb[8].mxu1 }
 0x21f   : > { %v1921_v18 = vadd.f32 %v4252_v12, %v1920_v14  ;;  %v1991_v19 = vadd.f32 %v4253_v13, %v1990_v15  ;;  %v4528_v20 = vpop.f32.mrb[11].mxu0  ;;  %v4539_v21 = vpop.f32.mrb[9].mxu1 }
 0x221   : > { %4602 = vmatpush3.xpose.msk.msra.mxu1 %vm2355_vm9, %v1921_v18  ;;  %4607 = vmatpush3.xpose.msk.msra.mxu0 %vm2355_vm9, %v1991_v19  ;;  %v2279_v19 = vpop.permute.xlu1 %2278 }
 0x222   : > { %4611 = vmatprep.subr.mxu1 %v5030_v8  ;;  %4616 = vmatprep.subr.mxu0 %v5030_v8 }
 0x224   : > { %4604 = vmatmul.mubr.msk.f32.vlgmr.msra.gmra.mrb[16].mxu1 %vm2355_vm9, %v1641_v22  ;;  %4609 = vmatmul.mubr.msk.f32.vlgmr.msra.gmra.mrb[20].mxu0 %vm2355_vm9, %v1711_v23 }
 0x225   : > { %4613 = vmatprep.mubr.msk.f32.mxu1 %vm5029_vm1, %v5030_v8  ;;  %4618 = vmatprep.mubr.msk.f32.mxu0 %vm5029_vm1, %v5030_v8 }
 0x226   : > { %v2060_v26 = vpop.f32.mrb[12].mxu0  ;;  %v2130_v27 = vpop.f32.mrb[10].mxu1 }
 0x227   : > { %v2061_v28 = vadd.f32 %v4254_v24, %v2060_v26  ;;  %v2131_v29 = vadd.f32 %v4255_v25, %v2130_v27  ;;  %v4550_v30 = vpop.f32.mrb[13].mxu0  ;;  %v4561_v31 = vpop.f32.mrb[11].mxu1 }
 0x229   : > { %4612 = vmatpush3.msra.mxu1 %v2061_v28  ;;  %4617 = vmatpush3.msra.mxu0 %v2131_v29 }
 0x22a   : > { %4621 = vmatprep.subr.mxu1 %v5030_v8  ;;  %4626 = vmatprep.subr.mxu0 %v5030_v8 }
 0x22e   : > { %v5473_v33 = vpop.f32.mrb[14].mxu0  ;;  %v5475_v34 = vpop.f32.mrb[12].mxu1 }
 0x22f   : > { %v4572_v35 = vpop.f32.mrb[15].mxu0  ;;  %v4583_v36 = vpop.f32.mrb[13].mxu1 }
 0x233   : > { %v5477_v37 = vpop.f32.mrb[16].mxu0 }
 0x234   : > { %v4590_v38 = vpop.f32.mrb[17].mxu0  ;;  %v2352_v27 = vadd.f32 %v5477_v37, %v2279_v19 }
 0x236   : > { %v2771_v35 = vadd.f32 1.0, %v2352_v27 }
 0x2ef   : > { %v2428_v39 = vpop.f32.mrb[14].mxu1  ;;  %v2504_v40 = vpop.f32.mrb[18].mxu0 }
 0x2f0   : > { %v4595_v43 = vpop.f32.mrb[15].mxu1  ;;  %v4600_v44 = vpop.f32.mrb[19].mxu0  ;;  %v2660_v52 = vmul.f32 0.35355338, %v2428_v39  ;;  %v2661_v53 = vmul.f32 0.35355338, %v2504_v40 }
 0x2f1   : > { %v2774_v40 = vrot.slane %v2352_v27, 4 }
 0x2f7   : > { %v2580_v54 = vpop.f32.mrb[16].mxu1  ;;  %v2656_v55 = vpop.f32.mrb[20].mxu0 }
 0x2f8   : > { %v2662_v57 = vmul.f32 0.35355338, %v2580_v54  ;;  %v2663_v58 = vmul.f32 0.35355338, %v2656_v55  ;;  %v4605_v59 = vpop.f32.mrb[17].mxu1  ;;  %v4610_v60 = vpop.f32.mrb[21].mxu0 }
 0x2fa   : > { %v2664_v61 = vcombine.low %v2660_v52, %v2662_v57  ;;  %v2665_v62 = vcombine.high %v2660_v52, %v2662_v57  ;;  %v2680_v63 = vcombine.low %v2661_v53, %v2663_v58  ;;  %v2681_v0 = vcombine.high %v2661_v53, %v2663_v58 }
 0x2fc   : > { %v2672_v2 = vrot.slane %v2664_v61, %v5480_v56  ;;  %v2679_v4 = vrot.slane %v2665_v62, %v5480_v56  ;;  %v2688_v5 = vrot.slane %v2680_v63, %v5480_v56  ;;  %v2695_v6 = vrot.slane %v2681_v0, %v5480_v56 }
 0x2fe   : > { %v2696_v7 = vcombine.low %v2672_v2, %v2688_v5  ;;  %v2697_v9 = vcombine.high %v2672_v2, %v2688_v5  ;;  %v2712_v10 = vcombine.low %v2679_v4, %v2695_v6  ;;  %v2713_v11 = vcombine.high %v2679_v4, %v2695_v6 }
 0x300   : > { %v2711_v12 = vrot.slane %v2697_v9, %v5483_v1  ;;  %v2704_v13 = vrot.slane %v2696_v7, %v5483_v1  ;;  %v2720_v14 = vrot.slane %v2712_v10, %v5483_v1  ;;  %v2727_v16 = vrot.slane %v2713_v11, %v5483_v1 }
 0x302   : > { %2737 = vrot.lane.b32.xlu0 %v2711_v12, %s5035_s17  ;;  %v2728_v32 = vcombine.high %v2704_v13, %v5030_v8  ;;  %v2729_v15 = vcombine.high %v2711_v12, %v5030_v8  ;;  %v2730_v17 = vcombine.high %v2720_v14, %v5030_v8  ;;  %v2731_v18 = vcombine.high %v2727_v16, %v5030_v8  ;;  %s5041_s17 = smov 56  }
 0x304   : > { %2733 = vrot.lane.b32.xlu1 %v2728_v32, %s5036_s26  ;;  %s5044_s26 = smov 96  }
 0x306   : > { %2745 = vrot.lane.b32.xlu0 %v2720_v14, %s5037_s10  ;;  %s5045_s10 = smov 104  }
 0x308   : > { %2741 = vrot.lane.b32.xlu1 %v2729_v15, %s5038_s16  ;;  %s5046_s16 = smov 80  }
 0x30a   : > { %2753 = vrot.lane.b32.xlu0 %v2727_v16, %s5039_s3  ;;  %s5042_s3 = smov 112  }
 0x30c   : > { %2749 = vrot.lane.b32.xlu1 %v2730_v17, %s5040_s4  ;;  %s5043_s4 = smov 120  }
 0x310   : > { %2757 = vrot.lane.b32.xlu1 %v2731_v18, %s5041_s17  ;;  %s5047_s17 = smov 88  }
 0x374   : > { %v2738_v20 = vpop.permute.xlu0 %2737 }
 0x376   : > { %v2734_v21 = vpop.permute.xlu1 %2733 }
 0x377   : > { %v2760_v22 = vsel %vm2355_vm9, %v2704_v13, %v2734_v21 }
 0x378   : > { %v2761_v23 = vsel %vm2281_vm8, %v2760_v22, %v2738_v20  ;;  %v2746_v25 = vpop.permute.xlu0 %2745 }
 0x37a   : > { %v2742_v24 = vpop.permute.xlu1 %2741 }
 0x37b   : > { %v2763_v26 = vsel %vm2762_vm10, %v2761_v23, %v2742_v24 }
 0x37c   : > { %v2764_v28 = vsel %vm1119_vm6, %v2763_v26, %v2746_v25  ;;  %v2754_v31 = vpop.permute.xlu0 %2753 }
 0x37e   : > { %v2750_v29 = vpop.permute.xlu1 %2749 }
 0x37f   : > { %v2766_v30 = vsel %vm2765_vm11, %v2764_v28, %v2750_v29 }
 0x380   : > { %v2768_v36 = vsel %vm2767_vm12, %v2766_v30, %v2754_v31 }
 0x382   : > { %v2758_v38 = vpop.permute.xlu1 %2757 }
 0x383   : > { %v2770_v39 = vsel %vm2769_vm13, %v2768_v36, %v2758_v38 }
 0x384   : > { %v2772_v41 = vmul.f32 %v2771_v35, %v2770_v39 }
 0x386   : > { %v5501_v42 = vadd.f32 %v2774_v40, %v2772_v41  ;;  %v4257_v41 = vld [vmem:[%s5723_s8 + $0xb] ss:$0 sm:$0xff] }
 0x388   : > { %2781 = vrot.lane.b32.xlu1 %v5501_v42, %s5042_s3  ;;  %2778 = vrot.lane.b32.xlu0 %v5501_v42, %s5043_s4  ;;  %s5732_s3 = sld [smem:[#allocation10_spill]]  ;;  %s5733_s4 = sld [smem:[#allocation24_spill]] }
 0x38c   : > { %2787 = vrot.lane.b32.xlu1 %v5501_v42, %s5044_s26  ;;  %2784 = vrot.lane.b32.xlu0 %v5501_v42, %s5045_s10  ;;  %s5734_s26 = sld [smem:[#allocation13_spill]]  ;;  %s5735_s10 = sld [smem:[#allocation15_spill]] }
 0x390   : > { %2793 = vrot.lane.b32.xlu1 %v5501_v42, %s5046_s16  ;;  %2790 = vrot.lane.b32.xlu0 %v5501_v42, %s5047_s17  ;;  %s5736_s16 = sld [smem:[#allocation16_spill]]  ;;  %s5737_s17 = sld [smem:[#allocation23_spill]] }
 0x394   : > { %2796 = vrot.lane.b32.xlu0 %v5501_v42, %s5048_s5  ;;  %s5731_s5 = sld [smem:[#allocation11_spill]] }
 0x3fa   : > { %v2782_v37 = vpop.permute.xlu1 %2781  ;;  %v2779_v43 = vpop.permute.xlu0 %2778 }
 0x3fb   : > { %v2799_v52 = vcombine.low %v5501_v42, %v2782_v37 }
 0x3fd   : > { %v2806_v57 = vrot.slane %v2799_v52, %v5480_v56 }
 0x3fe   : > { %v2788_v44 = vpop.permute.xlu1 %2787  ;;  %v2785_v45 = vpop.permute.xlu0 %2784 }
 0x3ff   : > { %v2807_v46 = vcombine.low %v2779_v43, %v2785_v45  ;;  %v4256_v43 = vld [vmem:[%s5723_s8 + $0xa] ss:$0 sm:$0xff] }
 0x401   : > { %v2814_v53 = vrot.slane %v2807_v46, %v5480_v56  ;;  %v2271_v46 = vadd.f32 %v4257_v41, %v5475_v34 }
 0x402   : > { %v2794_v48 = vpop.permute.xlu1 %2793  ;;  %v2791_v50 = vpop.permute.xlu0 %2790 }
 0x403   : > { %v2815_v54 = vcombine.low %v2788_v44, %v2794_v48  ;;  %v2831_v59 = vcombine.low %v2806_v57, %v2814_v53  ;;  %v2832_v62 = vcombine.high %v2806_v57, %v2814_v53  ;;  %v3206_v57 = vld [vmem:[%s5103_s14 + $0x18] sm:$0xff] }
 0x405   : > { %v2822_v60 = vrot.slane %v2815_v54, %v5480_v56  ;;  %v2839_v2 = vrot.slane %v2831_v59, %v5483_v1  ;;  %v2846_v9 = vrot.slane %v2832_v62, %v5483_v1  ;;  %v3205_v59 = vld [vmem:[%s5103_s14 + $0x10] sm:$0xff] }
 0x406   : > { %v2797_v55 = vpop.permute.xlu0 %2796 }
 0x407   : > { %v2823_v58 = vcombine.low %v2791_v50, %v2797_v55  ;;  %v2201_v50 = vadd.f32 %v4256_v43, %v5473_v33  ;;  %v3203_v33 = vld [vmem:[%s5103_s14] sm:$0xff]  ;;  %v3204_v55 = vld [vmem:[%s5103_s14 + $0x8] sm:$0xff] }
 0x408   : > { %v3634_v43 = vld [vmem:[%s5734_s26 + $0x20] sm:$0xff] }
 0x409   : > { %v2830_v61 = vrot.slane %v2823_v58, %v5480_v56 }
 0x40b   : > { %v2847_v63 = vcombine.low %v2822_v60, %v2830_v61  ;;  %v2848_v0 = vcombine.high %v2822_v60, %v2830_v61  ;;  %v3545_v60 = vld [vmem:[%s5731_s5] sm:$0xff]  ;;  %v3546_v61 = vld [vmem:[%s5731_s5 + $0x8] sm:$0xff] }
 0x40d   : > { %v2855_v4 = vrot.slane %v2847_v63, %v5483_v1  ;;  %v2862_v5 = vrot.slane %v2848_v0, %v5483_v1 }
 0x40f   : > { %v2864_v6 = vcombine.high %v2839_v2, %v2855_v4  ;;  %v2863_v7 = vcombine.low %v2839_v2, %v2855_v4  ;;  %v2865_v12 = vcombine.low %v2846_v9, %v2862_v5  ;;  %v2866_v13 = vcombine.high %v2846_v9, %v2862_v5  ;;  %v3547_v4 = vld [vmem:[%s5731_s5 + $0x10] sm:$0xff]  ;;  %v3548_v5 = vld [vmem:[%s5731_s5 + $0x18] sm:$0xff]  ;;  %s5741_s5 = sld [smem:[#allocation26_spill]] }
 0x410   : > { %v4790_v2 = vpack.c.bf16 %v3546_v61, %v3545_v60  ;;  %v3637_v60 = vld [vmem:[%s5734_s26 + $0x38] sm:$0xff] }
 0x411   : > { %v2870_v10 = vsel %vm2355_vm9, %v2864_v6, -inf  ;;  %v2867_v11 = vsel %vm2355_vm9, %v2863_v7, -inf  ;;  %v2873_v56 = vsel %vm2355_vm9, %v2865_v12, -inf  ;;  %v2876_v32 = vsel %vm2355_vm9, %v2866_v13, -inf }
 0x412   : > { %2871 = vmax.xlane.f32.xlu0 %v2870_v10  ;;  %2868 = vmax.xlane.f32.xlu1 %v2867_v11  ;;  %v4793_v11 = vpack.c.bf16 %v3548_v5, %v3547_v4 }
 0x416   : > { %2874 = vmax.xlane.f32.xlu0 %v2873_v56  ;;  %2877 = vmax.xlane.f32.xlu1 %v2876_v32 }
 0x49f   : > { %v2872_v14 = vpop.xlane.xlu0 %2871  ;;  %v2869_v15 = vpop.xlane.xlu1 %2868 }
 0x4a0   : > { %v2880_v16 = vsub.f32 %v2864_v6, %v2872_v14  ;;  %v2879_v17 = vsub.f32 %v2863_v7, %v2869_v15 }
 0x4a2   : > { %v2885_v18 = vmul.f32 1.442695, %v2880_v16  ;;  %v2883_v1 = vmul.f32 1.442695, %v2879_v17 }
 0x4a3   : > { %v2875_v19 = vpop.xlane.xlu0 %2874  ;;  %v2878_v20 = vpop.xlane.xlu1 %2877 }
 0x4a4   : > { %4910 = vpow2.f32 %v2885_v18  ;;  %v2881_v21 = vsub.f32 %v2865_v12, %v2875_v19  ;;  %v2882_v22 = vsub.f32 %v2866_v13, %v2878_v20 }
 0x4a5   : > { %4912 = vpow2.f32 %v2883_v1 }
 0x4a6   : > { %v2887_v23 = vmul.f32 1.442695, %v2881_v21  ;;  %v2889_v24 = vmul.f32 1.442695, %v2882_v22 }
 0x4a8   : > { %4914 = vpow2.f32 %v2887_v23  ;;  %v4287_v23 = vld [vmem:[%s5732_s3] ss:$0 sm:$0xff]  ;;  %s5738_s3 = sld [smem:[#allocation12_spill]] }
 0x4a9   : > { %4916 = vpow2.f32 %v2889_v24 }
 0x4ae   : > { %v4911_v25 = vpop.eup %4910 }
 0x4af   : > { %v4913_v26 = vpop.eup %4912  ;;  %v2894_v27 = vsel %vm2355_vm9, %v4911_v25, 0.0 }
 0x4b0   : > { %2895 = vadd.xlane.f32.xlu1 %v2894_v27  ;;  %v2891_v28 = vsel %vm2355_vm9, %v4913_v26, 0.0 }
 0x4b1   : > { %2892 = vadd.xlane.f32.xlu0 %v2891_v28 }
 0x4b2   : > { %v4915_v29 = vpop.eup %4914 }
 0x4b3   : > { %v4917_v30 = vpop.eup %4916  ;;  %v2897_v31 = vsel %vm2355_vm9, %v4915_v29, 0.0 }
 0x4b4   : > { %v2900_v35 = vsel %vm2355_vm9, %v4917_v30, 0.0 }
 0x4b5   : > { %2898 = vadd.xlane.f32.xlu0 %v2897_v31  ;;  %2901 = vadd.xlane.f32.xlu1 %v2900_v35 }
 0x53d   : > { %v2896_v36 = vpop.xlane.xlu1 %2895 }
 0x53e   : > { %v2893_v38 = vpop.xlane.xlu0 %2892  ;;  %4918 = vrcp.f32 %v2896_v36  ;;  %v3751_v36 = vld [vmem:[%s5733_s4] sm:$0xff] }
 0x53f   : > { %4920 = vrcp.f32 %v2893_v38  ;;  %v3630_v38 = vld [vmem:[%s5734_s26] sm:$0xff] }
 0x542   : > { %v2899_v39 = vpop.xlane.xlu0 %2898  ;;  %v2902_v40 = vpop.xlane.xlu1 %2901 }
 0x543   : > { %4922 = vrcp.f32 %v2899_v39  ;;  %v3631_v39 = vld [vmem:[%s5734_s26 + $0x8] sm:$0xff] }
 0x544   : > { %4924 = vrcp.f32 %v2902_v40  ;;  %v3632_v40 = vld [vmem:[%s5734_s26 + $0x10] sm:$0xff]  ;;  %v4796_v41 = vpack.c.bf16 %v3631_v39, %v3630_v38 }
 0x548   : > { %v4919_v37 = vpop.eup %4918 }
 0x549   : > { %v4921_v44 = vpop.eup %4920  ;;  %v2906_v45 = vmul.f32 %v4919_v37, %v4911_v25  ;;  %v3633_v37 = vld [vmem:[%s5734_s26 + $0x18] sm:$0xff] }
 0x54a   : > { %v2904_v48 = vmul.f32 %v4921_v44, %v4913_v26  ;;  %v3635_v44 = vld [vmem:[%s5734_s26 + $0x28] sm:$0xff] }
 0x54b   : > { %4619 = vmatmul.mubr.msk.f32.vlgmr.msra.gmra.mrb[22].mxu0 %vm2355_vm9, %v2906_v45  ;;  %v4802_v45 = vpack.c.bf16 %v3635_v44, %v3634_v43 }
 0x54c   : > { %4614 = vmatmul.mubr.msk.f32.vlgmr.msra.gmra.mrb[18].mxu1 %vm2355_vm9, %v2904_v48  ;;  %4627 = vmatpush3.msra.mxu0 %v2271_v46 }
 0x54d   : > { %v4923_v52 = vpop.eup %4922  ;;  %4622 = vmatpush3.msra.mxu1 %v2201_v50  ;;  %4623 = vmatprep.mubr.msk.f32.mxu1 %vm5029_vm1, %v5030_v8 }
 0x54e   : > { %v4925_v53 = vpop.eup %4924  ;;  %v2908_v54 = vmul.f32 %v4923_v52, %v4915_v29  ;;  %4628 = vmatprep.mubr.msk.f32.mxu0 %vm5029_vm1, %v5030_v8  ;;  %4631 = vmatprep.subr.mxu1 %v5030_v8 }
 0x54f   : > { %v2910_v34 = vmul.f32 %v4925_v53, %v4917_v30  ;;  %4636 = vmatprep.subr.mxu0 %v5030_v8  ;;  %v4288_v53 = vld [vmem:[%s5735_s10] ss:$0 sm:$0xff]  ;;  %s5739_s10 = sld [smem:[#allocation14_spill]] }
 0x550   : > { %4624 = vmatmul.mubr.msk.f32.vlgmr.msra.gmra.mrb[20].mxu1 %vm2355_vm9, %v2908_v54 }
 0x551   : > { %4629 = vmatmul.mubr.msk.f32.vlgmr.msra.gmra.mrb[24].mxu0 %vm2355_vm9, %v2910_v34  ;;  %4632 = vmatpush3.msra.mxu1 %v3203_v33  ;;  %v4289_v33 = vld [vmem:[%s5736_s16] ss:$0 sm:$0xff]  ;;  %s5740_s16 = sld [smem:[#allocation25_spill]] }
 0x552   : > { %4633 = vmatprep.mubr.msk.f32.mxu1 %vm5029_vm1, %v5030_v8  ;;  %4638 = vmatprep.mubr.msk.f32.mxu0 %vm5029_vm1, %v5030_v8 }
 0x553   : > { %4641 = vmatprep.subr.mxu1 %v5030_v8  ;;  %4637 = vmatpush3.msra.mxu0 %v3204_v55 }
 0x554   : > { %4646 = vmatprep.subr.mxu0 %v5030_v8 }
 0x61e   : > { %v3053_v58 = vpop.f32.mrb[22].mxu0 }
 0x61f   : > { %v2980_v62 = vpop.f32.mrb[18].mxu1  ;;  %v4620_v63 = vpop.f32.mrb[23].mxu0  ;;  %4639 = vmatmul.mubr.msk.f32.vlgmr.msra.gmra.mrb[26].mxu0 %vm2355_vm9, %v3053_v58  ;;  %v3750_v58 = vld [vmem:[%s5737_s17 + $0x8] sm:$0xff] }
 0x620   : > { %v4615_v0 = vpop.f32.mrb[19].mxu1  ;;  %4634 = vmatmul.mubr.msk.f32.vlgmr.msra.gmra.mrb[22].mxu1 %vm2355_vm9, %v2980_v62  ;;  %4647 = vmatpush3.msra.mxu0 %v3206_v57  ;;  %v3749_v57 = vld [vmem:[%s5737_s17] sm:$0xff] }
 0x621   : > { %4642 = vmatpush3.msra.mxu1 %v3205_v59  ;;  %4643 = vmatprep.mubr.msk.f32.mxu1 %vm5029_vm1, %v5030_v8  ;;  %v3636_v59 = vld [vmem:[%s5734_s26 + $0x30] sm:$0xff]  ;;  %v4290_v62 = vld [vmem:[%s5738_s3] ss:$0 sm:$0xff]  ;;  %s5743_s3 = sld [smem:[#allocation19_spill]] }
 0x622   : > { %4648 = vmatprep.mubr.msk.f32.mxu0 %vm5029_vm1, %v5030_v8  ;;  %4789 = vmatprep.subr.bf16.mxu1 %v5028_v3  ;;  %v4805_v61 = vpack.c.bf16 %v3637_v60, %v3636_v59 }
 0x623   : > { %v3126_v6 = vpop.f32.mrb[20].mxu1  ;;  %4795 = vmatprep.subr.bf16.mxu0 %v5028_v3 }
 0x624   : > { %v3199_v7 = vpop.f32.mrb[24].mxu0  ;;  %v4625_v9 = vpop.f32.mrb[21].mxu1  ;;  %4644 = vmatmul.mubr.msk.f32.vlgmr.msra.gmra.mrb[24].mxu1 %vm2355_vm9, %v3126_v6  ;;  %v4292_v6 = vld [vmem:[%s5739_s10] ss:$0 sm:$0xff]  ;;  %s5744_s10 = sld [smem:[#allocation17_spill]] }
 0x625   : > { %v4630_v10 = vpop.f32.mrb[25].mxu0  ;;  %4649 = vmatmul.mubr.msk.f32.vlgmr.msra.gmra.mrb[28].mxu0 %vm2355_vm9, %v3199_v7  ;;  %4791 = vmatpush3.bf16.msra.mxu1 %v4790_v2 }
 0x626   : > { %4792 = vmatprep.subr.bf16.mxu1 %v5028_v3  ;;  %4659 = vmatprep.mubr.msk.f32.mxu1 %vm5029_vm1, %v5030_v8 }
 0x627   : > { %4678 = vmatprep.mubr.msk.f32.mxu0 %vm5029_vm1, %v5030_v8  ;;  %4797 = vmatpush3.bf16.msra.mxu0 %v4796_v41  ;;  %v3907_v43 = vld [vmem:[%s5743_s3] sm:$0xff]  ;;  %v3908_v44 = vld [vmem:[%s5743_s3 + $0x8] sm:$0xff] }
 0x628   : > { %4798 = vmatprep.subr.bf16.mxu0 %v5028_v3 }
 0x629   : > { %4794 = vmatpush3.bf16.msra.mxu1 %v4793_v11 }
 0x62a   : > { %4681 = vmatprep.subr.msk.mxu1 %vm3770_vm14, %v5501_v42 }
 0x6f2   : > { %v3349_v12 = vpop.f32.mrb[26].mxu0 }
 0x6f3   : > { %v3276_v13 = vpop.f32.mrb[22].mxu1  ;;  %v3500_v56 = vsel %vm1119_vm6, %v3349_v12, 0.0  ;;  %v4640_v32 = vpop.f32.mrb[27].mxu0 }
 0x6f4   : > { %v3499_v14 = vsel %vm1119_vm6, %v3276_v13, 0.0  ;;  %v4635_v15 = vpop.f32.mrb[23].mxu1  ;;  %v3752_v13 = vld [vmem:[%s5733_s4 + $0x8] sm:$0xff]  ;;  %s5746_s4 = sld [smem:[#allocation20_spill]] }
 0x6f5   : > { %v3501_v16 = vadd.f32 %v3500_v56, %v3499_v14  ;;  %v3879_v56 = vld [vmem:[%s5740_s16] sm:$0xff]  ;;  %v3880_v32 = vld [vmem:[%s5740_s16 + $0x8] sm:$0xff] }
 0x6f6   : > { %v3893_v14 = vld [vmem:[%s5741_s5] sm:$0xff]  ;;  %v3894_v15 = vld [vmem:[%s5741_s5 + $0x8] sm:$0xff]  ;;  %s1023_s5 = scalar_lea.vmem %s5218_s24, %s5284_s15 }
 0x6f7   : > { %v3422_v17 = vpop.f32.mrb[24].mxu1 }
 0x6f8   : > { %v3502_v18 = vsel %vm1119_vm6, %v3422_v17, 0.0  ;;  %v3495_v1 = vpop.f32.mrb[28].mxu0  ;;  %v4645_v19 = vpop.f32.mrb[25].mxu1 }
 0x6f9   : > { %v3503_v20 = vadd.f32 %v3502_v18, %v3501_v16  ;;  %v4650_v21 = vpop.f32.mrb[29].mxu0  ;;  %v3504_v22 = vsel %vm1119_vm6, %v3495_v1, 0.0 }
 0x6fb   : > { %v3505_v24 = vadd.f32 %v3504_v22, %v3503_v20 }
 0x6fd   : > { %v3513_v25 = vadd.f32 %v4287_v23, %v3505_v24 }
 0x6ff   : > { %v3514_v26 = vadd.f32 %v3513_v25, %v5324_v51  ;;  %v4799_v51 = vpack.c.bf16 %v3633_v37, %v3632_v40 }
 0x701   : > { %v3517_v27 = vsel %vm1119_vm6, %v3514_v26, 0.0  ;;  %4800 = vmatpush3.bf16.msra.mxu0 %v4799_v51 }
 0x702   : > { %3518 = vadd.xlane.f32.xlu0 %v3517_v27  ;;  %4801 = vmatprep.subr.bf16.mxu0 %v5028_v3 }
 0x705   : > { %4803 = vmatpush3.bf16.msra.mxu0 %v4802_v45 }
 0x706   : > { %4804 = vmatprep.subr.bf16.mxu0 %v5028_v3 }
 0x709   : > { %4806 = vmatpush3.bf16.msra.mxu0 %v4805_v61 }
 0x70a   : > { %4813 = vmatprep.subr.bf16.mxu0 %v5028_v3 }
 0x78f   : > { %v3519_v28 = vpop.xlane.xlu0 %3518 }
 0x790   : > { %v3521_v29 = vmul.f32 0.03125, %v3519_v28 }
 0x792   : > { %v3522_v30 = vsub.f32 %v3514_v26, %v3521_v29 }
 0x794   : > { %v3523_v31 = vmul.f32 %v3522_v30, %v3522_v30 }
 0x796   : > { %v3524_v35 = vsel %vm1119_vm6, %v3523_v31, 0.0 }
 0x797   : > { %3525 = vadd.xlane.f32.xlu1 %v3524_v35 }
 0x7a8   : > { %3755 = vperm.xlu1 %4909, %v3751_v36  }
 0x824   : > { %v3526_v46 = vpop.xlane.xlu1 %3525 }
 0x825   : > { %v3527_v48 = vmul.f32 0.03125, %v3526_v46  ;;  %v4808_v46 = vpack.c.bf16 %v3908_v44, %v3907_v43 }
 0x827   : > { %v3528_v50 = vadd.f32 1e-05, %v3527_v48 }
 0x828   : > { %v3756_v1 = vpop.permute.xlu1 %3755 }
 0x829   : > { %4926 = vrsqrt.f32 %v3528_v50  ;;  %v3909_v50 = vld [vmem:[%s5743_s3 + $0x10] sm:$0xff] }
 0x833   : > { %v4927_v52 = vpop.eup %4926 }
 0x834   : > { %v3530_v54 = vmul.f32 %v4927_v52, %v3522_v30  ;;  %v3910_v52 = vld [vmem:[%s5743_s3 + $0x18] sm:$0xff]  ;;  %s5745_s3 = sld [smem:[#allocation18_spill]] }
 0x836   : > { %v3537_v34 = vmul.f32 %v4288_v53, %v3530_v54  ;;  %v4811_v54 = vpack.c.bf16 %v3910_v52, %v3909_v50 }
 0x838   : > { %v3544_v55 = vadd.f32 %v4289_v33, %v3537_v34 }
 0x83a   : > { %4660 = vmatmul.mubr.msk.f32.vlgmr.msra.gmra.mrb[26].mxu1 %vm1119_vm6, %v3544_v55 }
 0x83b   : > { %4682 = vmatpush3.msk.msra.mxu1 %vm3770_vm14, %v5501_v42  ;;  %4683 = vmatprep.mubr.msk.f32.mxu1 %vm3763_vm15, %v3749_v57 }
 0x83c   : > { %4807 = vmatprep.subr.bf16.mxu1 %v5028_v3 }
 0x83e   : > { %4684 = vmatmul.mubr.msk.f32.vlgmr.msra.gmra.mrb[28].mxu1 %vm3763_vm15, %v3750_v58 }
 0x83f   : > { %4694 = vmatprep.mubr.msk.f32.mxu1 %vm5029_vm1, %v5030_v8  ;;  %4809 = vmatpush3.bf16.msra.mxu1 %v4808_v46 }
 0x840   : > { %4810 = vmatprep.subr.bf16.mxu1 %v5028_v3 }
 0x843   : > { %4812 = vmatpush3.bf16.msra.mxu1 %v4811_v54 }
 0x90d   : > { %v3625_v63 = vpop.f32.mrb[26].mxu1 }
 0x90e   : > { %v3626_v0 = vadd.f32 %v4290_v62, %v3625_v63  ;;  %v4661_v42 = vpop.f32.mrb[27].mxu1 }
 0x910   : > { %v3629_v2 = vmax.f32 %v3626_v0, 0.0 }
 0x911   : > { %v4685_v4 = vpop.f32.mrb[28].mxu1 }
 0x912   : > { %4679 = vmatmul.mubr.msk.f32.vlgmr.msra.gmra.mrb[30].mxu0 %vm3645_vm0, %v3629_v2  ;;  %v3839_v5 = vpop.f32.mrb[29].mxu1 }
 0x913   : > { %4701 = vmatprep.mubr.msk.f32.mxu0 %vm5029_vm1, %v5030_v8  ;;  %v3993_v8 = vld [vmem:[%s5742_s6] sm:$0x1f]  ;;  %v3840_v19 = vadd.f32 %v3839_v5, %v3756_v1  ;;  %vm4072_vm1 = vcmask 520192   ;;  %s1000_s6 = sand.u32 1, %s4986_s1  }
 0x914   : > { %s4235_s8 = sshll.u32 %s1000_s6, 3  ;;  %s4075_s15 = scalar_lea.sflag [#allocation3], %s1000_s6 }
 0x915   : > { %v3848_v23 = vadd.f32 %v3840_v19, %v5431_v49  ;;  %s1002_s9 = scalar_lea.vmem [#allocation2], %s4235_s8  ;;  %s5049_s8 = smov [#allocation2]  }
 0x916   : > { %s4092_s12 = sshll.u32 %s1002_s9, 4  ;;  %s5645_s12 = int_to_ptr.vmem [resolvable:$true] %s4092_s12 }
 0x917   : > { %v3850_v26 = vsel %vm3645_vm0, %v3848_v23, 0.0 }
 0x9e5   : > { %v3715_v7 = vpop.f32.mrb[30].mxu0 }
 0x9e6   : > { %v3716_v9 = vadd.f32 %v4292_v6, %v3715_v7  ;;  %v4680_v10 = vpop.f32.mrb[31].mxu0 }
 0x9e8   : > { %v3719_v11 = vadd.f32 %v3716_v9, %v3544_v55  ;;  %v3992_v9 = vld [vmem:[%s5203_s20] sm:$0x1f] }
 0x9ea   : > { %v3722_v12 = vsel %vm1119_vm6, %v3719_v11, 0.0 }
 0x9eb   : > { %3723 = vadd.xlane.f32.xlu0 %v3722_v12 }
 0xa01   : > { %3760 = vperm.xlu0 %4908, %v3752_v13  }
 0xa05   : > { %3883 = vperm.xlu0 %4908, %v3879_v56   ;;  %v4294_v56 = vld [vmem:[%s5744_s10] ss:$0 sm:$0xff]  ;;  %s4303_s10 = sshll.u32 %s5241_s0, 7  ;;  %s4936_s0 = sshll.u32 %s5049_s8, 4  ;;  %s4937_s0 = int_to_ptr.vmem [resolvable:$false] %s4936_s0 }
 0xa06   : > { %p4939_p0 = scmp.lt.s32.totalorder %s5645_s12, %s4937_s0 }
 0xa09   : > { %3888 = vperm.xlu0 %4908, %v3880_v32  }
 0xa0d   : > { %3897 = vperm.xlu0 %4908, %v3893_v14   ;;  %v4295_v14 = vld [vmem:[%s5745_s3] ss:$0 sm:$0xff]  ;;  %s5643_s3 = scalar_lea.hbm %s5213_s19, %s4303_s10 }
 0xa11   : > { %3902 = vperm.xlu0 %4908, %v3894_v15  }
 0xa15   : > { %3996 = vperm.xlu0 %4908, %v3993_v8  }
 0xa78   : > { %v3724_v16 = vpop.xlane.xlu0 %3723 }
 0xa79   : > { %v3725_v17 = vmul.f32 0.03125, %v3724_v16 }
 0xa7b   : > { %v5615_v18 = vsub.f32 %v3719_v11, %v3725_v17 }
 0xa7d   : > { %v3727_v20 = vmul.f32 %v5615_v18, %v5615_v18 }
 0xa7f   : > { %v3728_v21 = vsel %vm1119_vm6, %v3727_v20, 0.0  ;;  %v4299_v20 = vld [vmem:[%s5746_s4] ss:$0 sm:$0xff]  ;;  %s4938_s4 = scalar_lea.vmem %s4937_s0, 256 }
 0xa80   : > { %3729 = vadd.xlane.f32.xlu1 %v3728_v21  ;;  %v3761_v22 = vpop.permute.xlu0 %3760 }
 0xa81   : > { %v3845_v24 = vadd.f32 %v4685_v4, %v3761_v22 }
 0xa83   : > { %v3849_v25 = vadd.f32 %v3845_v24, %v5429_v47 }
 0xa84   : > { %v3884_v59 = vpop.permute.xlu0 %3883 }
 0xa85   : > { %v3851_v27 = vsel %vm3645_vm0, %v3849_v25, 0.0 }
 0xa86   : > { %v3852_v28 = vadd.f32 %v3851_v27, %v3850_v26 }
 0xa88   : > { %v3853_v29 = vrot.slane %v3852_v28, 4  ;;  %v3889_v61 = vpop.permute.xlu0 %3888 }
 0xa8a   : > { %v3854_v30 = vadd.f32 %v3853_v29, %v3852_v28 }
 0xa8c   : > { %v3855_v31 = vrot.slane %v3854_v30, 2  ;;  %v3898_v62 = vpop.permute.xlu0 %3897 }
 0xa8e   : > { %v3856_v35 = vadd.f32 %v3855_v31, %v3854_v30 }
 0xa90   : > { %v3857_v36 = vrot.slane %v3856_v35, 1  ;;  %v3903_v4 = vpop.permute.xlu0 %3902 }
 0xa92   : > { %v3858_v38 = vadd.f32 %v3857_v36, %v3856_v35 }
 0xa94   : > { %v3860_v39 = vmul.f32 0.0625, %v3858_v38  ;;  %v3997_v16 = vpop.permute.xlu0 %3996 }
 0xa96   : > { %v3862_v49 = vsub.f32 %v3849_v25, %v3860_v39  ;;  %v3861_v40 = vsub.f32 %v3848_v23, %v3860_v39 }
 0xa98   : > { %v3864_v41 = vmul.f32 %v3862_v49, %v3862_v49  ;;  %v3863_v47 = vmul.f32 %v3861_v40, %v3861_v40 }
 0xa9a   : > { %v3866_v37 = vsel %vm3645_vm0, %v3864_v41, 0.0  ;;  %v3865_v51 = vsel %vm3645_vm0, %v3863_v47, 0.0 }
 0xa9b   : > { %v3867_v45 = vadd.f32 %v3866_v37, %v3865_v51 }
 0xa9d   : > { %v3868_v48 = vrot.slane %v3867_v45, 4 }
 0xa9f   : > { %v3869_v53 = vadd.f32 %v3868_v48, %v3867_v45 }
 0xaa1   : > { %v3870_v33 = vrot.slane %v3869_v53, 2 }
 0xaa3   : > { %v3871_v34 = vadd.f32 %v3870_v33, %v3869_v53 }
 0xaa5   : > { %v3872_v55 = vrot.slane %v3871_v34, 1 }
 0xaa7   : > { %v3873_v57 = vadd.f32 %v3872_v55, %v3871_v34 }
 0xaa9   : > { %v3874_v58 = vmul.f32 0.0625, %v3873_v57 }
 0xaab   : > { %v3875_v60 = vadd.f32 1e-05, %v3874_v58 }
 0xaad   : > { %4928 = vrsqrt.f32 %v3875_v60 }
 0xab7   : > { %v4929_v63 = vpop.eup %4928 }
 0xab8   : > { %v3877_v0 = vmul.f32 %v4929_v63, %v3861_v40  ;;  %v3878_v3 = vmul.f32 %v4929_v63, %v3862_v49 }
 0xaba   : > { %v3891_v42 = vmul.f32 %v3884_v59, %v3877_v0  ;;  %v3892_v2 = vmul.f32 %v3889_v61, %v3878_v3 }
 0xabc   : > { %v3905_v5 = vadd.f32 %v3898_v62, %v3891_v42  ;;  %v3906_v6 = vadd.f32 %v3903_v4, %v3892_v2 }
 0xabe   : > { %v4814_v7 = vpack.c.bf16 %v3906_v6, %v3905_v5 }
 0xac0   : > { %4815 = vmatpush3.bf16.msra.mxu0 %v4814_v7 }
 0xac3   : > { %4702 = vmatmul.mubr.msk.f32.vlgmr.msra.gmra.mrb[32].mxu0 %vm2281_vm8, %v3992_v9 }
 0xb0d   : > { %v3730_v10 = vpop.xlane.xlu1 %3729 }
 0xb0e   : > { %v3731_v11 = vmul.f32 0.03125, %v3730_v10 }
 0xb10   : > { %v3732_v12 = vadd.f32 1e-05, %v3731_v11 }
 0xb12   : > { %4930 = vrsqrt.f32 %v3732_v12 }
 0xb1c   : > { %v4931_v13 = vpop.eup %4930 }
 0xb1d   : > { %v3734_v32 = vmul.f32 %v4931_v13, %v5615_v18 }
 0xb1f   : > { %v3741_v15 = vmul.f32 %v4294_v56, %v3734_v32 }
 0xb21   : > { %v3748_v8 = vadd.f32 %v4295_v14, %v3741_v15 }
 0xb23   : > { %4695 = vmatmul.mubr.msk.f32.vlgmr.msra.gmra.mrb[30].mxu1 %vm1119_vm6, %v3748_v8 }
 0xb96   : > { %v4068_v17 = vpop.f32.mrb[32].mxu0 }
 0xb97   : > { %v4069_v1 = vadd.f32 %v4068_v17, %v3997_v16  ;;  %v4703_v19 = vpop.f32.mrb[33].mxu0 }
 0xb99   : > { %4073 = vst.msk [vmem:[%s1023_s5] sm:$0x1f] %vm4072_vm1, %v4069_v1  ;;  %s4932_s5 = scalar_lea.vmem %s5645_s12, 128 }
 0xb9a   : > { %p4933_p11 = scmp.ne.s32.totalorder %s5645_s12, %s4932_s5  ;;  %p4940_p1 = scmp.lt.s32.totalorder %s4938_s4, %s4932_s5 }
 0xb9c   : > { %p4934_p12 = pnand %p4933_p11, %p5258_p5  ;;  %p4941_p2 = por %p4940_p1, %p4939_p0 }
 0xb9e   : > { %p4935_p13 = pneg %p4934_p12 }
 0xba0   : > { %p4942_p3 = pnand %p4941_p2, %p4935_p13 }
 0xbf6   : > { %v3987_v18 = vpop.f32.mrb[30].mxu1 }
 0xbf7   : > { %v3988_v21 = vadd.f32 %v4299_v20, %v3987_v18  ;;  %v4696_v22 = vpop.f32.mrb[31].mxu1 }
 0xbf9   : > { %3991 = vst.msk [vmem:[%s1002_s9] sm:$0xff] %vm1036_vm4, %v3988_v21 }
 0xbfa   : > { %4945 = shalt.err (!%p4942_p3)
}
 0xbfb   : > { %s4946_s9 = scalar_lea.hbm %s5643_s3, 128  ;;  %s4950_s6 = scalar_lea.hbm %s5213_s19, 256 }
 0xbfc   : > { %p4947_p4 = scmp.ne.s32.totalorder %s5643_s3, %s4946_s9  ;;  %p4951_p9 = scmp.lt.u32.totalorder %s5643_s3, %s5213_s19 }
 0xbfd   : > { %p4952_p10 = scmp.lt.u32.totalorder %s4950_s6, %s4946_s9  ;;  %p4954_p12 = scmp.lt.u32.totalorder %s4946_s9, %s5643_s3 }
 0xbfe   : > { %p4948_p7 = pnand %p4947_p4, %p5258_p5 }
 0xbff   : > { %p4953_p11 = por %p4952_p10, %p4951_p9 }
 0xc00   : > { %p4949_p8 = pneg %p4948_p7 }
 0xc01   : > { %p4955_p0 = por %p4954_p12, %p4953_p11 }
 0xc03   : > { %p4956_p13 = pnand %p4955_p0, %p4949_p8 }
 0xc05   : > { %4959 = shalt.err (!%p4956_p13)
}
 0xc06   : > { %4816 = dma.vmem_to_hbm [thread:$0]  (%p5258_p5), %s5645_s12, 128, %s5643_s3, %s4075_s15  }
 0xc07 PF: > { %p4822_p1 = scmp.ge.s32.totalorder %s4994_s7, 2  ;;  %s4107_s10 = sand.u32 1, %s4982_s28  }
 0xc08   : > { %s4108_s5 = scalar_lea.sflag [#allocation3], %s4107_s10 }
 0xc09   : > { %p4819_p2 = pnand %p4822_p1, %p5262_p6 }
 0xc0b   : > { %4977 = dma.done.wait (!%p4819_p2), %s4108_s5, 128  }
 0xc0c   : > { %4979 = vsyncadd (!%p4819_p2), %s4108_s5, 4294967168  ;;  %p76_p3 = scmp.ge.s32.totalorder %s5245_s11, 4   ;;  %s5747_s28 = smov %s4986_s1 }
 0xc0d   : > { %s5748_s1 = smov %s4990_s2  ;;  %s5749_s2 = smov %s5256_s18 }
 0xc0e   : > { %s5750_s7 = smov %s5245_s11  ;;  %78 = sbr.rel (!%p76_p3) target bundleno = 62 (0x3e), region = 229 }
 0xc15   :  { %4120 = vsyncpa [#allocation3], 1 }
 0xc16   :  { %4122 = vsyncpa [#allocation3 + $0x1], 1 }

</bundles_post_ra>
